<compile_context>
chip_gen: v7x
topology: tpu7x:2x2x1
jax: 0.10.0
libtpu: 0.0.40
codegen_flags: <defaults>
</compile_context>

<pallas_src>
import functools

import numpy as np
import jax
import jax.numpy as jnp
from jax import lax
from jax.experimental import pallas as pl
from jax.experimental.pallas import tpu as pltpu

NEG_SLOPE = 0.01   # F.leaky_relu default negative_slope
BN_EPS = 1e-5      # nn.BatchNorm3d default eps


# ---------------------------------------------------------------------------
# Weight packing: fold the kw taps, the channel contraction AND the W padding
# of a 3x3x3 conv into one MXU contraction.  For every (kd, kh):
#   BW[kd*3+kh] : (W*C, W*C)
#   BW[kd*3+kh][iw*C + ci, ow*C + co] = weight[co, ci, kd, kh, kw]
#     with iw = ow + (kw - 1) * dil and 0 <= iw < W (out-of-range taps are
#     simply absent -> implements zero padding along W).
# One matmul of an *unpadded* row strip (M, W*C) against BW[kd*3+kh] yields the
# lane-dense (M, W*C) contribution of that (kd, kh) tap.
# ---------------------------------------------------------------------------
def pack_block_weights(w_torch, spatial_w, dil):
    wt = np.asarray(w_torch, np.float32)          # (Cout, Cin, 3, 3, 3)
    co, ci = wt.shape[0], wt.shape[1]
    bw = np.zeros((3, 3, spatial_w, ci, spatial_w, co), np.float32)
    for kd in range(3):
        for kh in range(3):
            for kw in range(3):
                tap = wt[:, :, kd, kh, kw].T      # (Cin, Cout)
                for ow in range(spatial_w):
                    iw = ow + (kw - 1) * dil
                    if 0 <= iw < spatial_w:
                        bw[kd, kh, iw, :, ow, :] = tap
    return jnp.asarray(bw.reshape(9, spatial_w * ci, spatial_w * co))


# ---------------------------------------------------------------------------
# Tile-size selection (VMEM budgeted; keeps >=2 parallel steps when possible).
# ---------------------------------------------------------------------------
def _largest_divisor(n, ok):
    best = 1
    for t in range(1, n + 1):
        if n % t == 0 and ok(t):
            best = t
    return best


def _choose_depth_tile(N, D, H, WC, dil, itemsize,
                       vmem_budget=20 << 20, max_rows=1024):
    def ok(td):
        slab = (td + 2 * dil) * (H + 2 * dil) * WC * itemsize   # halo slab
        yblk = 2 * td * H * WC * itemsize                       # dbl-buffered out
        if slab + yblk > vmem_budget or td * H > max_rows:
            return False
        if N * D >= 2 and N * (D // td) < 2:    # keep 2 steps for v7x megacore
            return False
        return True
    return _largest_divisor(D, ok)


def _choose_row_tile(nrows, lanes, itemsize=4, vmem_budget=8 << 20):
    def ok(rb):
        if 4 * 2 * rb * lanes * itemsize > vmem_budget:
            return False
        if nrows >= 2 and nrows // rb < 2:      # keep 2 steps for v7x megacore
            return False
        return True
    return _largest_divisor(nrows, ok)


# ---------------------------------------------------------------------------
# Pass A kernel: one (n, depth-tile) step = conv (+ bias) + partial BN stats.
# The whole halo slab is brought in with a single manual DMA per step.
# ---------------------------------------------------------------------------
def _conv_stats_kernel(td, dil, H, x_hbm, bw_ref, b_ref, y_ref, st_ref,
                       slab_ref, sem_ref):
    n = pl.program_id(0)
    dt = pl.program_id(1)
    d0 = pl.multiple_of(dt * td, td)
    cp = pltpu.make_async_copy(
        x_hbm.at[n, pl.ds(d0, td + 2 * dil)], slab_ref, sem_ref)
    cp.start()
    cp.wait()

    wc = y_ref.shape[-1]
    acc = jnp.zeros((td * H, wc), jnp.float32)
    for kd in range(3):
        for kh in range(3):
            lhs = slab_ref[kd * dil:kd * dil + td,
                           kh * dil:kh * dil + H, :].reshape(td * H, wc)
            acc = acc + jnp.dot(lhs, bw_ref[kd * 3 + kh],
                                preferred_element_type=jnp.float32)
    acc = acc + b_ref[...]                                  # conv bias (1, W*C)
    y_ref[...] = acc.astype(y_ref.dtype)                    # (TD*H, W*C)
    st_ref[0:1, :] = jnp.sum(acc, axis=0, keepdims=True)    # per-step BN sums
    st_ref[1:2, :] = jnp.sum(acc * acc, axis=0, keepdims=True)


def _conv_stats_call(N, D, H, WC, dil, td, compute_dtype):
    DT = D // td
    Hp = H + 2 * dil
    isz = jnp.dtype(compute_dtype).itemsize
    est = ((td + 2 * dil) * Hp * WC * isz          # slab scratch
           + 2 * 9 * WC * WC * isz                 # weights (dbl-buffered)
           + 2 * td * H * WC * isz                 # y out block (dbl-buffered)
           + 4 * 2 * WC * 4 + (2 << 20))           # stats + slack
    return pl.pallas_call(
        functools.partial(_conv_stats_kernel, td, dil, H),
        grid=(N, DT),
        in_specs=[
            pl.BlockSpec(memory_space=pl.ANY),                    # padded input (HBM)
            pl.BlockSpec((9, WC, WC), lambda n, d: (0, 0, 0)),    # block weights
            pl.BlockSpec((1, WC), lambda n, d: (0, 0)),           # bias
        ],
        out_specs=(
            pl.BlockSpec((None, td * H, WC), lambda n, d: (n, d, 0)),
            pl.BlockSpec((None, None, 2, WC), lambda n, d: (n, d, 0, 0)),
        ),
        out_shape=(
            jax.ShapeDtypeStruct((N, D * H, WC), compute_dtype),  # conv output
            jax.ShapeDtypeStruct((N, DT, 2, WC), jnp.float32),    # partial stats
        ),
        scratch_shapes=[
            pltpu.VMEM((td + 2 * dil, Hp, WC), compute_dtype),    # halo slab
            pltpu.SemaphoreType.DMA,
        ],
        compiler_params=pltpu.CompilerParams(
            dimension_semantics=("parallel", "parallel"),
            vmem_limit_bytes=int(min(48 << 20, max(16 << 20, 2 * est)))),
    )


# ---------------------------------------------------------------------------
# Pass B kernel: lane-dense normalize (+ residual) + LeakyReLU on row tiles of
# the (N*D, H*W*C) view.
# ---------------------------------------------------------------------------
def _bn_act_kernel(has_res, *refs):
    if has_res:
        y_ref, sc_ref, sh_ref, r_ref, o_ref = refs
    else:
        y_ref, sc_ref, sh_ref, o_ref = refs
        r_ref = None
    z = y_ref[...].astype(jnp.float32) * sc_ref[...] + sh_ref[...]
    if has_res:
        z = z + r_ref[...].astype(jnp.float32)
    o_ref[...] = jnp.where(z >= 0.0, z, NEG_SLOPE * z).astype(o_ref.dtype)


def _bn_act_call(nrows, lanes, rb, has_res, out_dtype):
    row = pl.BlockSpec((rb, lanes), lambda i: (i, 0))
    vec = pl.BlockSpec((1, lanes), lambda i: (0, 0))
    in_specs = [row, vec, vec] + ([row] if has_res else [])
    est = (4 + (1 if has_res else 0)) * 2 * rb * lanes * 4 + (1 << 20)
    return pl.pallas_call(
        functools.partial(_bn_act_kernel, has_res),
        grid=(nrows // rb,),
        in_specs=in_specs,
        out_specs=row,
        out_shape=jax.ShapeDtypeStruct((nrows, lanes), out_dtype),
        compiler_params=pltpu.CompilerParams(
            dimension_semantics=("parallel",),
            vmem_limit_bytes=int(min(48 << 20, max(16 << 20, 2 * est)))),
    )


# ---------------------------------------------------------------------------
# BN statistics -> per-channel scale/shift (tiny XLA reduce).
# Training-mode BN: batch statistics, biased variance.
# ---------------------------------------------------------------------------
def _bn_scale_shift(partial_stats, gamma, beta, count, W, C):
    n0, n1 = partial_stats.shape[0], partial_stats.shape[1]
    s = partial_stats.reshape(n0, n1, 2, W, C).sum(axis=(0, 1, 3))   # (2, C)
    mean = s[0] / count
    var = s[1] / count - mean * mean
    scale_c = gamma * lax.rsqrt(var + BN_EPS)
    shift_c = beta - mean * scale_c
    return scale_c, shift_c


def _tile_wc(v, W, C):
    return jnp.broadcast_to(v[None, :], (W, C)).reshape(1, W * C).astype(jnp.float32)


def _tile_hwc(v, H, W, C):
    return jnp.broadcast_to(v[None, :], (H * W, C)).reshape(1, H * W * C).astype(jnp.float32)


# ---------------------------------------------------------------------------
# Wrapper
# ---------------------------------------------------------------------------
def residual_block_forward(x_ncdhw, params, compute_dtype=jnp.bfloat16):
    """Pallas implementation of ResidualBlock.forward.  x: (N, C, D, H, W)."""
    N, C, D, H, W = x_ncdhw.shape
    dil = int(params["dilation"])
    WC = W * C
    HWC = H * WC
    isz = jnp.dtype(compute_dtype).itemsize
    count = float(N * D * H * W)

    # NCDHW -> NDHWC (channels last, W folded onto lanes inside the kernels)
    x = jnp.transpose(x_ncdhw, (0, 2, 3, 4, 1)).astype(jnp.float32)
    x_lanes = x.reshape(N, D, H, WC)

    # Width-folded block weights (init-time preprocessing, W-padding baked in).
    bw1 = pack_block_weights(params["_w1_torch"], W, dil).astype(compute_dtype)
    bw2 = pack_block_weights(params["_w2_torch"], W, 1).astype(compute_dtype)

    # ---- stage 1: conv1 (padding=dilation, dilation=dil) + bn1 + leaky_relu
    # TODO(synk): the D/H halo pads are still materialized by XLA; folding them
    # into the slab DMA (clamped starts + boundary masks) saves a round trip.
    xpad = jnp.pad(x_lanes, ((0, 0), (dil, dil), (dil, dil), (0, 0))
                   ).astype(compute_dtype)
    td1 = _choose_depth_tile(N, D, H, WC, dil, isz)
    y1, st1 = _conv_stats_call(N, D, H, WC, dil, td1, compute_dtype)(
        xpad, bw1, _tile_wc(params["b1"], W, C))
    sc1, sh1 = _bn_scale_shift(st1, params["g1"], params["beta1"], count, W, C)

    rb = _choose_row_tile(N * D, HWC)
    a1 = _bn_act_call(N * D, HWC, rb, has_res=False, out_dtype=compute_dtype)(
        y1.reshape(N * D, HWC), _tile_hwc(sc1, H, W, C), _tile_hwc(sh1, H, W, C))

    # ---- stage 2: conv2 (padding=1, dilation=1) + bn2 + residual + leaky_relu
    # TODO(synk): fuse bn1+leaky_relu into this conv's slab load (with in-kernel
    # halo masking) to remove the a1 round trip and this pad entirely.
    a1pad = jnp.pad(a1.reshape(N, D, H, WC), ((0, 0), (1, 1), (1, 1), (0, 0)))
    td2 = _choose_depth_tile(N, D, H, WC, 1, isz)
    y2, st2 = _conv_stats_call(N, D, H, WC, 1, td2, compute_dtype)(
        a1pad, bw2, _tile_wc(params["b2"], W, C))
    sc2, sh2 = _bn_scale_shift(st2, params["g2"], params["beta2"], count, W, C)

    out = _bn_act_call(N * D, HWC, rb, has_res=True, out_dtype=jnp.float32)(
        y2.reshape(N * D, HWC), _tile_hwc(sc2, H, W, C), _tile_hwc(sh2, H, W, C),
        x_lanes.reshape(N * D, HWC))

    out = out.reshape(N, D, H, W, C)
    return jnp.transpose(out, (0, 4, 1, 2, 3))      # back to NCDHW


# ---------------------------------------------------------------------------
# Synthetic params + pure-JAX reference
# ---------------------------------------------------------------------------
def init_params(key, channels, dilation=2):
    """Deterministic synthetic parameters matching nn.Conv3d / nn.BatchNorm3d."""
    c = channels
    k1, k2, k3, k4 = jax.random.split(key, 4)
    bound = 1.0 / float(np.sqrt(c * 27))

    def conv_w(k):        # torch layout (out, in, kd, kh, kw)
        return jax.random.uniform(k, (c, c, 3, 3, 3), jnp.float32, -bound, bound)

    return {
        "dilation": dilation,
        "_w1_torch": conv_w(k1),
        "_w2_torch": conv_w(k3),
        "b1": jax.random.uniform(k2, (c,), jnp.float32, -bound, bound),
        "b2": jax.random.uniform(k4, (c,), jnp.float32, -bound, bound),
        "g1": jnp.ones((c,), jnp.float32), "beta1": jnp.zeros((c,), jnp.float32),
        "g2": jnp.ones((c,), jnp.float32), "beta2": jnp.zeros((c,), jnp.float32),
    }


def reference_forward(x_ncdhw, params):
    """Pure-JAX reference (same math as the PyTorch module in training mode)."""
    dil = params["dilation"]
    x = jnp.transpose(x_ncdhw, (0, 2, 3, 4, 1)).astype(jnp.float32)
    c = x.shape[-1]

    def conv(inp, wt, b, d, p):
        w = jnp.transpose(wt, (2, 3, 4, 1, 0))              # DHWIO
        y = lax.conv_general_dilated(
            inp, w, window_strides=(1, 1, 1), padding=[(p, p)] * 3,
            rhs_dilation=(d, d, d),
            dimension_numbers=("NDHWC", "DHWIO", "NDHWC"),
            precision=lax.Precision.HIGHEST)
        return y + b.reshape(1, 1, 1, 1, c)

    def bn(y, g, beta):
        m = jnp.mean(y, axis=(0, 1, 2, 3), keepdims=True)
        v = jnp.var(y, axis=(0, 1, 2, 3), keepdims=True)
        return (y - m) * lax.rsqrt(v + BN_EPS) * g.reshape(1, 1, 1, 1, c) \
            + beta.reshape(1, 1, 1, 1, c)

    def lrelu(z):
        return jnp.where(z >= 0, z, NEG_SLOPE * z)

    out = lrelu(bn(conv(x, params["_w1_torch"], params["b1"], dil, dil),
                   params["g1"], params["beta1"]))
    out = bn(conv(out, params["_w2_torch"], params["b2"], 1, 1),
             params["g2"], params["beta2"]) + x
    return jnp.transpose(lrelu(out), (0, 4, 1, 2, 3))


if __name__ == "__main__":
    key = jax.random.PRNGKey(0)
    kx, kp = jax.random.split(key)

    # W*C = 128 so every activation presented to the kernels is lane-dense.
    N, C, D, H, W = 2, 8, 8, 16, 16
    x = jax.random.normal(kx, (N, C, D, H, W), dtype=jnp.float32)
    params = init_params(kp, C, dilation=2)

    ref = jax.block_until_ready(reference_forward(x, params))

    # Precise path: f32 everywhere -> tight tolerance.
    out_f32 = jax.block_until_ready(
        residual_block_forward(x, params, compute_dtype=jnp.float32))
    assert out_f32.shape == (N, C, D, H, W), out_f32.shape
    assert jnp.allclose(out_f32, ref, rtol=1e-3, atol=1e-3), \
        float(jnp.max(jnp.abs(out_f32 - ref)))

    # Fast path: bf16 MXU inputs AND bf16 intermediate storage (y1/a1/y2),
    # f32 accumulation / BN stats / epilogue -> looser tolerance.
    out_bf16 = jax.block_until_ready(
        residual_block_forward(x, params, compute_dtype=jnp.bfloat16))
    assert jnp.allclose(out_bf16, ref, rtol=1e-1, atol=1e-1), \
        float(jnp.max(jnp.abs(out_bf16 - ref)))

    print("KERNEL_OK")
</pallas_src>

<mosaic_0001>
module attributes {stable_mosaic.version = 11 : i64} {
  func.func @_conv_stats_kernel(%arg0: i32, %arg1: i32, %arg2: memref<2x12x20x128xf32, #tpu.memory_space<any>>, %arg3: memref<9x128x128xf32, #tpu.memory_space<vmem>>, %arg4: memref<1x128xf32, #tpu.memory_space<vmem>>, %arg5: memref<1x128x128xf32, #tpu.memory_space<vmem>>, %arg6: memref<1x1x2x128xf32, #tpu.memory_space<vmem>>, %arg7: memref<12x20x128xf32, #tpu.memory_space<vmem>>, %arg8: memref<!tpu.dma_semaphore, #tpu.memory_space<semaphore_mem>>) attributes {dimension_semantics = [#tpu.dimension_semantics<parallel>, #tpu.dimension_semantics<parallel>], iteration_bounds = array<i64: 2, 1>, scalar_prefetch = 0 : i64, scratch_operands = 2 : i64, tpu.core_type = #tpu.core_type<tc>, window_params = [{}, {pipeline_mode = #tpu.pipeline_mode<synchronous>, transform_indices = @transform_1, window_bounds = array<i64: 9, 128, 128>}, {pipeline_mode = #tpu.pipeline_mode<synchronous>, transform_indices = @transform_2, window_bounds = array<i64: 1, 128>}, {transform_indices = @transform_3, window_bounds = array<i64: 1, 128, 128>}, {transform_indices = @transform_4, window_bounds = array<i64: 1, 1, 2, 128>}]} {
    %c8_i32 = arith.constant 8 : i32
    %0 = arith.muli %arg1, %c8_i32 : i32
    %1 = tpu.assume_multiple %0, 8 : i32
    %c0_i32 = arith.constant 0 : i32
    %c0_i32_0 = arith.constant 0 : i32
    %2 = tpu.memref_slice %arg2[%arg0, %1, %c0_i32, %c0_i32_0] : memref<2x12x20x128xf32, #tpu.memory_space<any>> -> memref<1x12x20x128xf32, #tpu.memory_space<any>>
    %3 = tpu.memref_squeeze %2 : memref<1x12x20x128xf32, #tpu.memory_space<any>> -> memref<12x20x128xf32, #tpu.memory_space<any>>
    tpu.enqueue_dma source(%3 : memref<12x20x128xf32, #tpu.memory_space<any>>) target(%arg7 : memref<12x20x128xf32, #tpu.memory_space<vmem>>) target_semaphore(%arg8 : memref<!tpu.dma_semaphore, #tpu.memory_space<semaphore_mem>>)
    %c0_i32_1 = arith.constant 0 : i32
    %c0_i32_2 = arith.constant 0 : i32
    %4 = tpu.memref_slice %arg2[%arg0, %1, %c0_i32_1, %c0_i32_2] : memref<2x12x20x128xf32, #tpu.memory_space<any>> -> memref<1x12x20x128xf32, #tpu.memory_space<any>>
    %5 = tpu.memref_squeeze %4 : memref<1x12x20x128xf32, #tpu.memory_space<any>> -> memref<12x20x128xf32, #tpu.memory_space<any>>
    tpu.wait_dma2 semaphore(%arg8 : memref<!tpu.dma_semaphore, #tpu.memory_space<semaphore_mem>>) src(%5 : memref<12x20x128xf32, #tpu.memory_space<any>>) dst(%arg7 : memref<12x20x128xf32, #tpu.memory_space<vmem>>)
    %cst = arith.constant 0.000000e+00 : f32
    %6 = vector.broadcast %cst : f32 to vector<128x128xf32>
    %c0 = arith.constant 0 : index
    %c0_3 = arith.constant 0 : index
    %c0_4 = arith.constant 0 : index
    %7 = vector.load %arg7[%c0, %c0_3, %c0_4] : memref<12x20x128xf32, #tpu.memory_space<vmem>>, vector<8x16x128xf32>
    %8 = vector.shape_cast %7 : vector<8x16x128xf32> to vector<128x128xf32>
    %c0_5 = arith.constant 0 : index
    %c0_6 = arith.constant 0 : index
    %c0_7 = arith.constant 0 : index
    %9 = vector.load %arg3[%c0_5, %c0_6, %c0_7] : memref<9x128x128xf32, #tpu.memory_space<vmem>>, vector<1x128x128xf32>
    %10 = vector.shape_cast %9 : vector<1x128x128xf32> to vector<128x128xf32>
    %cst_8 = arith.constant dense<0.000000e+00> : vector<128x128xf32>
    %11 = tpu.matmul %8, %10, %cst_8 {dimension_numbers = #tpu.dot_dimension_numbers<[1], [0], [0], [1], [0, 0, 1, 1], [], []>} : vector<128x128xf32>, vector<128x128xf32>, vector<128x128xf32> -> vector<128x128xf32>
    %12 = arith.addf %6, %11 : vector<128x128xf32>
    %c0_9 = arith.constant 0 : index
    %c2 = arith.constant 2 : index
    %c0_10 = arith.constant 0 : index
    %13 = vector.load %arg7[%c0_9, %c2, %c0_10] : memref<12x20x128xf32, #tpu.memory_space<vmem>>, vector<8x16x128xf32>
    %14 = vector.shape_cast %13 : vector<8x16x128xf32> to vector<128x128xf32>
    %c1 = arith.constant 1 : index
    %c0_11 = arith.constant 0 : index
    %c0_12 = arith.constant 0 : index
    %15 = vector.load %arg3[%c1, %c0_11, %c0_12] : memref<9x128x128xf32, #tpu.memory_space<vmem>>, vector<1x128x128xf32>
    %16 = vector.shape_cast %15 : vector<1x128x128xf32> to vector<128x128xf32>
    %cst_13 = arith.constant dense<0.000000e+00> : vector<128x128xf32>
    %17 = tpu.matmul %14, %16, %cst_13 {dimension_numbers = #tpu.dot_dimension_numbers<[1], [0], [0], [1], [0, 0, 1, 1], [], []>} : vector<128x128xf32>, vector<128x128xf32>, vector<128x128xf32> -> vector<128x128xf32>
    %18 = arith.addf %12, %17 : vector<128x128xf32>
    %c0_14 = arith.constant 0 : index
    %c4 = arith.constant 4 : index
    %c0_15 = arith.constant 0 : index
    %19 = vector.load %arg7[%c0_14, %c4, %c0_15] : memref<12x20x128xf32, #tpu.memory_space<vmem>>, vector<8x16x128xf32>
    %20 = vector.shape_cast %19 : vector<8x16x128xf32> to vector<128x128xf32>
    %c2_16 = arith.constant 2 : index
    %c0_17 = arith.constant 0 : index
    %c0_18 = arith.constant 0 : index
    %21 = vector.load %arg3[%c2_16, %c0_17, %c0_18] : memref<9x128x128xf32, #tpu.memory_space<vmem>>, vector<1x128x128xf32>
    %22 = vector.shape_cast %21 : vector<1x128x128xf32> to vector<128x128xf32>
    %cst_19 = arith.constant dense<0.000000e+00> : vector<128x128xf32>
    %23 = tpu.matmul %20, %22, %cst_19 {dimension_numbers = #tpu.dot_dimension_numbers<[1], [0], [0], [1], [0, 0, 1, 1], [], []>} : vector<128x128xf32>, vector<128x128xf32>, vector<128x128xf32> -> vector<128x128xf32>
    %24 = arith.addf %18, %23 : vector<128x128xf32>
    %c2_20 = arith.constant 2 : index
    %c0_21 = arith.constant 0 : index
    %c0_22 = arith.constant 0 : index
    %25 = vector.load %arg7[%c2_20, %c0_21, %c0_22] : memref<12x20x128xf32, #tpu.memory_space<vmem>>, vector<8x16x128xf32>
    %26 = vector.shape_cast %25 : vector<8x16x128xf32> to vector<128x128xf32>
    %c3 = arith.constant 3 : index
    %c0_23 = arith.constant 0 : index
    %c0_24 = arith.constant 0 : index
    %27 = vector.load %arg3[%c3, %c0_23, %c0_24] : memref<9x128x128xf32, #tpu.memory_space<vmem>>, vector<1x128x128xf32>
    %28 = vector.shape_cast %27 : vector<1x128x128xf32> to vector<128x128xf32>
    %cst_25 = arith.constant dense<0.000000e+00> : vector<128x128xf32>
    %29 = tpu.matmul %26, %28, %cst_25 {dimension_numbers = #tpu.dot_dimension_numbers<[1], [0], [0], [1], [0, 0, 1, 1], [], []>} : vector<128x128xf32>, vector<128x128xf32>, vector<128x128xf32> -> vector<128x128xf32>
    %30 = arith.addf %24, %29 : vector<128x128xf32>
    %c2_26 = arith.constant 2 : index
    %c2_27 = arith.constant 2 : index
    %c0_28 = arith.constant 0 : index
    %31 = vector.load %arg7[%c2_26, %c2_27, %c0_28] : memref<12x20x128xf32, #tpu.memory_space<vmem>>, vector<8x16x128xf32>
    %32 = vector.shape_cast %31 : vector<8x16x128xf32> to vector<128x128xf32>
    %c4_29 = arith.constant 4 : index
    %c0_30 = arith.constant 0 : index
    %c0_31 = arith.constant 0 : index
    %33 = vector.load %arg3[%c4_29, %c0_30, %c0_31] : memref<9x128x128xf32, #tpu.memory_space<vmem>>, vector<1x128x128xf32>
    %34 = vector.shape_cast %33 : vector<1x128x128xf32> to vector<128x128xf32>
    %cst_32 = arith.constant dense<0.000000e+00> : vector<128x128xf32>
    %35 = tpu.matmul %32, %34, %cst_32 {dimension_numbers = #tpu.dot_dimension_numbers<[1], [0], [0], [1], [0, 0, 1, 1], [], []>} : vector<128x128xf32>, vector<128x128xf32>, vector<128x128xf32> -> vector<128x128xf32>
    %36 = arith.addf %30, %35 : vector<128x128xf32>
    %c2_33 = arith.constant 2 : index
    %c4_34 = arith.constant 4 : index
    %c0_35 = arith.constant 0 : index
    %37 = vector.load %arg7[%c2_33, %c4_34, %c0_35] : memref<12x20x128xf32, #tpu.memory_space<vmem>>, vector<8x16x128xf32>
    %38 = vector.shape_cast %37 : vector<8x16x128xf32> to vector<128x128xf32>
    %c5 = arith.constant 5 : index
    %c0_36 = arith.constant 0 : index
    %c0_37 = arith.constant 0 : index
    %39 = vector.load %arg3[%c5, %c0_36, %c0_37] : memref<9x128x128xf32, #tpu.memory_space<vmem>>, vector<1x128x128xf32>
    %40 = vector.shape_cast %39 : vector<1x128x128xf32> to vector<128x128xf32>
    %cst_38 = arith.constant dense<0.000000e+00> : vector<128x128xf32>
    %41 = tpu.matmul %38, %40, %cst_38 {dimension_numbers = #tpu.dot_dimension_numbers<[1], [0], [0], [1], [0, 0, 1, 1], [], []>} : vector<128x128xf32>, vector<128x128xf32>, vector<128x128xf32> -> vector<128x128xf32>
    %42 = arith.addf %36, %41 : vector<128x128xf32>
    %c4_39 = arith.constant 4 : index
    %c0_40 = arith.constant 0 : index
    %c0_41 = arith.constant 0 : index
    %43 = vector.load %arg7[%c4_39, %c0_40, %c0_41] : memref<12x20x128xf32, #tpu.memory_space<vmem>>, vector<8x16x128xf32>
    %44 = vector.shape_cast %43 : vector<8x16x128xf32> to vector<128x128xf32>
    %c6 = arith.constant 6 : index
    %c0_42 = arith.constant 0 : index
    %c0_43 = arith.constant 0 : index
    %45 = vector.load %arg3[%c6, %c0_42, %c0_43] : memref<9x128x128xf32, #tpu.memory_space<vmem>>, vector<1x128x128xf32>
    %46 = vector.shape_cast %45 : vector<1x128x128xf32> to vector<128x128xf32>
    %cst_44 = arith.constant dense<0.000000e+00> : vector<128x128xf32>
    %47 = tpu.matmul %44, %46, %cst_44 {dimension_numbers = #tpu.dot_dimension_numbers<[1], [0], [0], [1], [0, 0, 1, 1], [], []>} : vector<128x128xf32>, vector<128x128xf32>, vector<128x128xf32> -> vector<128x128xf32>
    %48 = arith.addf %42, %47 : vector<128x128xf32>
    %c4_45 = arith.constant 4 : index
    %c2_46 = arith.constant 2 : index
    %c0_47 = arith.constant 0 : index
    %49 = vector.load %arg7[%c4_45, %c2_46, %c0_47] : memref<12x20x128xf32, #tpu.memory_space<vmem>>, vector<8x16x128xf32>
    %50 = vector.shape_cast %49 : vector<8x16x128xf32> to vector<128x128xf32>
    %c7 = arith.constant 7 : index
    %c0_48 = arith.constant 0 : index
    %c0_49 = arith.constant 0 : index
    %51 = vector.load %arg3[%c7, %c0_48, %c0_49] : memref<9x128x128xf32, #tpu.memory_space<vmem>>, vector<1x128x128xf32>
    %52 = vector.shape_cast %51 : vector<1x128x128xf32> to vector<128x128xf32>
    %cst_50 = arith.constant dense<0.000000e+00> : vector<128x128xf32>
    %53 = tpu.matmul %50, %52, %cst_50 {dimension_numbers = #tpu.dot_dimension_numbers<[1], [0], [0], [1], [0, 0, 1, 1], [], []>} : vector<128x128xf32>, vector<128x128xf32>, vector<128x128xf32> -> vector<128x128xf32>
    %54 = arith.addf %48, %53 : vector<128x128xf32>
    %c4_51 = arith.constant 4 : index
    %c4_52 = arith.constant 4 : index
    %c0_53 = arith.constant 0 : index
    %55 = vector.load %arg7[%c4_51, %c4_52, %c0_53] : memref<12x20x128xf32, #tpu.memory_space<vmem>>, vector<8x16x128xf32>
    %56 = vector.shape_cast %55 : vector<8x16x128xf32> to vector<128x128xf32>
    %c8 = arith.constant 8 : index
    %c0_54 = arith.constant 0 : index
    %c0_55 = arith.constant 0 : index
    %57 = vector.load %arg3[%c8, %c0_54, %c0_55] : memref<9x128x128xf32, #tpu.memory_space<vmem>>, vector<1x128x128xf32>
    %58 = vector.shape_cast %57 : vector<1x128x128xf32> to vector<128x128xf32>
    %cst_56 = arith.constant dense<0.000000e+00> : vector<128x128xf32>
    %59 = tpu.matmul %56, %58, %cst_56 {dimension_numbers = #tpu.dot_dimension_numbers<[1], [0], [0], [1], [0, 0, 1, 1], [], []>} : vector<128x128xf32>, vector<128x128xf32>, vector<128x128xf32> -> vector<128x128xf32>
    %60 = arith.addf %54, %59 : vector<128x128xf32>
    %c0_57 = arith.constant 0 : index
    %c0_58 = arith.constant 0 : index
    %61 = vector.load %arg4[%c0_57, %c0_58] : memref<1x128xf32, #tpu.memory_space<vmem>>, vector<1x128xf32>
    %62 = vector.broadcast %61 : vector<1x128xf32> to vector<128x128xf32>
    %63 = arith.addf %60, %62 : vector<128x128xf32>
    %c0_59 = arith.constant 0 : index
    %c0_60 = arith.constant 0 : index
    %c0_61 = arith.constant 0 : index
    %64 = vector.load %arg5[%c0_59, %c0_60, %c0_61] : memref<1x128x128xf32, #tpu.memory_space<vmem>>, vector<1x128x128xf32>
    %65 = vector.shape_cast %64 : vector<1x128x128xf32> to vector<128x128xf32>
    %66 = vector.shape_cast %63 : vector<128x128xf32> to vector<1x128x128xf32>
    tpu.vector_store %arg5[%c0_59, %c0_60, %c0_61], %66 {strides = array<i32>} : memref<1x128x128xf32, #tpu.memory_space<vmem>>, vector<1x128x128xf32>,
    %cst_62 = arith.constant dense<0.000000e+00> : vector<128xf32>
    %67 = vector.multi_reduction <add>, %63, %cst_62 [0] : vector<128x128xf32> to vector<128xf32>
    %68 = vector.shape_cast %67 : vector<128xf32> to vector<1x128xf32>
    %c0_63 = arith.constant 0 : index
    %c0_64 = arith.constant 0 : index
    %c0_65 = arith.constant 0 : index
    %c0_66 = arith.constant 0 : index
    %69 = vector.load %arg6[%c0_63, %c0_64, %c0_65, %c0_66] : memref<1x1x2x128xf32, #tpu.memory_space<vmem>>, vector<1x1x1x128xf32>
    %70 = vector.shape_cast %69 : vector<1x1x1x128xf32> to vector<1x128xf32>
    %71 = vector.shape_cast %68 : vector<1x128xf32> to vector<1x1x1x128xf32>
    tpu.vector_store %arg6[%c0_63, %c0_64, %c0_65, %c0_66], %71 {strides = array<i32>} : memref<1x1x2x128xf32, #tpu.memory_space<vmem>>, vector<1x1x1x128xf32>,
    %72 = arith.mulf %63, %63 : vector<128x128xf32>
    %cst_67 = arith.constant dense<0.000000e+00> : vector<128xf32>
    %73 = vector.multi_reduction <add>, %72, %cst_67 [0] : vector<128x128xf32> to vector<128xf32>
    %74 = vector.shape_cast %73 : vector<128xf32> to vector<1x128xf32>
    %c0_68 = arith.constant 0 : index
    %c0_69 = arith.constant 0 : index
    %c1_70 = arith.constant 1 : index
    %c0_71 = arith.constant 0 : index
    %75 = vector.load %arg6[%c0_68, %c0_69, %c1_70, %c0_71] : memref<1x1x2x128xf32, #tpu.memory_space<vmem>>, vector<1x1x1x128xf32>
    %76 = vector.shape_cast %75 : vector<1x1x1x128xf32> to vector<1x128xf32>
    %77 = vector.shape_cast %74 : vector<1x128xf32> to vector<1x1x1x128xf32>
    tpu.vector_store %arg6[%c0_68, %c0_69, %c1_70, %c0_71], %77 {strides = array<i32>} : memref<1x1x2x128xf32, #tpu.memory_space<vmem>>, vector<1x1x1x128xf32>,
    return
  }
  func.func @transform_1(%arg0: i32, %arg1: i32) -> (i32, i32, i32) {
    %c0_i32 = arith.constant 0 : i32
    %c0_i32_0 = arith.constant 0 : i32
    %c0_i32_1 = arith.constant 0 : i32
    %c0_i32_2 = arith.constant 0 : i32
    return %c0_i32, %c0_i32_0, %c0_i32_1 : i32, i32, i32
  }
  func.func @transform_2(%arg0: i32, %arg1: i32) -> (i32, i32) {
    %c0_i32 = arith.constant 0 : i32
    %c0_i32_0 = arith.constant 0 : i32
    %c0_i32_1 = arith.constant 0 : i32
    return %c0_i32, %c0_i32_0 : i32, i32
  }
  func.func @transform_3(%arg0: i32, %arg1: i32) -> (i32, i32, i32) {
    %c0_i32 = arith.constant 0 : i32
    %c0_i32_0 = arith.constant 0 : i32
    return %arg0, %arg1, %c0_i32 : i32, i32, i32
  }
  func.func @transform_4(%arg0: i32, %arg1: i32) -> (i32, i32, i32, i32) {
    %c0_i32 = arith.constant 0 : i32
    %c0_i32_0 = arith.constant 0 : i32
    %c0_i32_1 = arith.constant 0 : i32
    return %arg0, %arg1, %c0_i32, %c0_i32_0 : i32, i32, i32, i32
  }
}

</mosaic_0001>

<bundles_post_ra>
// kernel: tpu_custom_call.1
= control target key start
LH: loop header
LB: loop body
LE: loop exit
PB: predicated region body
PF: predicated region fallthrough
CT: control target
= control target key end

     0   :  { %10 = vsyncpa [#allocation5], 0  ;;  %s4369_s0 = inlined_call_operand.vmem [shape: f32[2,12,20,128], index: 0, kind: input, shape index: {}]   ;;  %s4370_s1 = inlined_call_operand.hbm [shape: f32[9,128,128], index: 1, kind: input, shape index: {}]   ;;  %s4371_s2 = inlined_call_operand.vmem [shape: f32[1,128], index: 2, kind: input, shape index: {}]   ;;  %s4372_s3 = inlined_call_operand.hbm [shape: f32[2,128,128], index: 3, kind: output, shape index: {0}]   ;;  %s4373_s4 = inlined_call_operand.hbm [shape: f32[2,1,2,128], index: 4, kind: output, shape index: {1}]  }
   0x1   :  { %11 = vsyncpa [#allocation6], 0 }
   0x2   :  { %13 = vsyncpa [#allocation6 + $0x1], 0 }
   0x3   :  { %14 = vsyncpa [#allocation9], 0 }
   0x4   :  { %16 = vsyncpa [#allocation9 + $0x1], 0  ;;  %s3832_s15 = smov 0   ;;  %s3834_s16 = smov 0  }
   0x5   :  { %s3836_s17 = smov 0   ;;  %s3838_s18 = smov 0  }
   0x6   :  { %s3840_s19 = smov 0   ;;  %s3842_s20 = smov 0  }
   0x7 LB: > { %s2325_s21 = sadd.s32 4294967295, %s3798_s20   ;;  %s2326_s22 = sadd.s32 4294967294, %s3798_s20   ;;  %s3798_s20 = sphi %s3842_s20, %s22_s20   ;;  %s3794_s19 = sphi %s3840_s19, %s4391_s19   ;;  %s3790_s18 = sphi %s3838_s18, %s4390_s18   ;;  %s3786_s17 = sphi %s3836_s17, %s4389_s17   ;;  %s3782_s16 = sphi %s3834_s16, %s4388_s16   ;;  %s3778_s15 = sphi %s3832_s15, %s4387_s15  }
   0x8   : > { %s34_s23 = sadd.s32 1, %s3794_s19  ;;  %s85_s24 = sadd.s32 1, %s3786_s17 }
   0x9   : > { %p36_p0 = scmp.ge.s32.totalorder %s34_s23, 2  ;;  %p95_p1 = scmp.ne.s32.totalorder %s3786_s17, %s3782_s16 }
   0xa   : > { %p96_p2 = scmp.eq.s32.totalorder %s2325_s21, 1  ;;  %p101_p3 = scmp.ne.s32.totalorder %s3782_s16, %s3778_s15 }
   0xb   : > { %s4393_s23 = smov (%p36_p0, %s34_s23), 0  ;;  %p102_p5 = scmp.eq.s32.totalorder %s2326_s22, 1 }
   0xc   : > { %p3872_p4 = por %p96_p2, %p95_p1  ;;  %s80_s26 = ssub.s32 %s3794_s19, %s4393_s23 }
   0xd   : > { %p2327_p6 = scmp.ge.s32.totalorder %s3798_s20, 1  ;;  %p83_p7 = scmp.eq.s32.totalorder %s80_s26, 0 }
   0xe   : > { %s4378_s25 = scalar_select %p3872_p4, 1, 0 }
   0xf   : > { %p3879_p8 = por %p102_p5, %p101_p3  ;;  %p137_p9 = scmp.lt.s32.totalorder %s3798_s20, 3 }
  0x10   : > { %s3885_s28 = scalar_select %p83_p7, %s3786_s17, %s85_s24  }
  0x11   : > { %s4379_s27 = scalar_select %p3879_p8, 1, 0 }
  0x12   : > { %p3887_p10 = pnand %p2327_p6, %p137_p9  ;;  %p3891_p11 = scmp.eq.s32.totalorder %s2325_s21, 0 }
  0x13   : > { %s3800_s5 = smov [#allocation4]   ;;  %s3654_s10 = scalar_lea.hbm %s4370_s1, 18432 }
  0x14   : > { %s4380_s29 = scalar_select %p3887_p10, 1, 0 }
  0x15   : > { %s4381_s30 = scalar_select %p3891_p11, 1, 0 }
  0x16   : > { %p3587_p12 = pneg %p3887_p10  ;;  %s149_s6 = sshll.u32 %s3800_s5, 4  ;;  %s150_s6 = int_to_ptr.vmem [resolvable:$true] %s149_s6 }
  0x17   : > { %p3655_p0 = scmp.ne.s32.totalorder %s4370_s1, %s3654_s10  ;;  %p3661_p5 = scmp.lt.u32.totalorder %s3654_s10, %s4370_s1 }
  0x18   : > { %p3899_p13 = pnand %p3891_p11, %p3587_p12 }
  0x1a   : > { %p3656_p1 = pneg %p3899_p13 }
  0x1c   : > { %p3657_p2 = pnand %p3656_p1, %p3655_p0 }
  0x1e   : > { %p3658_p3 = pneg %p3657_p2 }
  0x20   : > { %p3663_p6 = pnand %p3661_p5, %p3658_p3 }
  0x22   : > { %3666 = shalt.err (!%p3663_p6)
}
  0x23   : > { %s3667_s21 = scalar_lea.vmem %s150_s6, 18432  ;;  %p3675_p8 = scmp.lt.s32.totalorder %s150_s6, %s150_s6 }
  0x24   : > { %p3668_p7 = scmp.ne.s32.totalorder %s150_s6, %s3667_s21  ;;  %p3676_p4 = scmp.lt.s32.totalorder %s3667_s21, %s3667_s21 }
  0x26   : > { %p3670_p9 = pnand %p3668_p7, %p3656_p1  ;;  %p3677_p11 = por %p3676_p4, %p3675_p8 }
  0x28   : > { %p3671_p12 = pneg %p3670_p9 }
  0x2a   : > { %p3678_p10 = pnand %p3677_p11, %p3671_p12 }
  0x2c   : > { %3681 = shalt.err (!%p3678_p10)
}
  0x2d   : > { %s3801_s22 = smov 128   ;;  %s3802_s24 = smov 8  }
  0x2e   : > { %3590 = dma.hbm_to_vmem [thread:$0]  (!%p3899_p13), %s4370_s1, 18432, %s150_s6, [#allocation5], %s3801_s22, %s3801_s22, %s3802_s24  }
  0x2f   : > { %p4383_p0 = scmp.ne.s32.totalorder %s4380_s29, 0 }
  0x30   : > { %p4384_p2 = scmp.ne.s32.totalorder (!%p4383_p0), %s4381_s30, 0 }
  0x31   : > { %168 = sbr.rel (%p4383_p0) target bundleno = 535 (0x217), region = 28 }
  0x38   : > { %3763 = dma.done.wait (%p4384_p2), [#allocation5], 18432  }
  0x39   : > { %3765 = vsyncadd (%p4384_p2), [#allocation5], 4294948864  ;;  %s3926_s8 = sand.u32 1, %s3782_s16   ;;  %s195_s7 = smul.u32 288, %s3790_s18 }
  0x3a   : > { %s2331_s9 = sshll.u32 %s3926_s8, 7  ;;  %s2332_s10 = sshll.u32 %s3926_s8, 1 }
  0x3b   : > { %s3934_s29 = scalar_lea.vmem %s4369_s0, %s195_s7  ;;  %s3974_s30 = scalar_lea.vmem [#allocation7], %s2331_s9 }
  0x3c   : > { %v257_v0 = vld [vmem:[%s3934_s29] sm:$0xff]  ;;  %v259_v1 = vld [vmem:[%s3934_s29 + $0x8] sm:$0xff]  ;;  %v261_v2 = vld [vmem:[%s3934_s29 + $0x18] sm:$0xff]  ;;  %s3978_s12 = scalar_lea.vmem [#allocation8], %s2332_s10 }
  0x3d   : > { %258 = vst [vmem:[#allocation2] sm:$0xff] %v257_v0  ;;  %260 = vst [vmem:[#allocation2 + $0x8] sm:$0xff] %v259_v1  ;;  %v263_v3 = vld [vmem:[%s3934_s29 + $0x20] sm:$0xff]  ;;  %v265_v4 = vld [vmem:[%s3934_s29 + $0x30] sm:$0xff] }
  0x3e   : > { %262 = vst [vmem:[#allocation2 + $0x18] sm:$0xff] %v261_v2  ;;  %v267_v5 = vld [vmem:[%s3934_s29 + $0x38] sm:$0xff]  ;;  %264 = vst [vmem:[#allocation2 + $0x20] sm:$0xff] %v263_v3  ;;  %v269_v6 = vld [vmem:[%s3934_s29 + $0x48] sm:$0xff] }
  0x3f   : > { %266 = vst [vmem:[#allocation2 + $0x30] sm:$0xff] %v265_v4  ;;  %268 = vst [vmem:[#allocation2 + $0x38] sm:$0xff] %v267_v5  ;;  %v271_v7 = vld [vmem:[%s3934_s29 + $0x50] sm:$0xff]  ;;  %v273_v8 = vld [vmem:[%s3934_s29 + $0x60] sm:$0xff] }
  0x40   : > { %270 = vst [vmem:[#allocation2 + $0x48] sm:$0xff] %v269_v6  ;;  %272 = vst [vmem:[#allocation2 + $0x50] sm:$0xff] %v271_v7  ;;  %v275_v9 = vld [vmem:[%s3934_s29 + $0x68] sm:$0xff]  ;;  %v277_v10 = vld [vmem:[%s3934_s29 + $0x78] sm:$0xff] }
  0x41   : > { %274 = vst [vmem:[#allocation2 + $0x60] sm:$0xff] %v273_v8  ;;  %v279_v11 = vld [vmem:[%s3934_s29 + $0x80] sm:$0xff]  ;;  %276 = vst [vmem:[#allocation2 + $0x68] sm:$0xff] %v275_v9  ;;  %v281_v12 = vld [vmem:[%s3934_s29 + $0x90] sm:$0xff] }
  0x42   : > { %278 = vst [vmem:[#allocation2 + $0x78] sm:$0xff] %v277_v10  ;;  %280 = vst [vmem:[#allocation2 + $0x80] sm:$0xff] %v279_v11  ;;  %v283_v13 = vld [vmem:[%s3934_s29 + $0x98] sm:$0xff]  ;;  %v285_v14 = vld [vmem:[%s3934_s29 + $0xa8] sm:$0xff] }
  0x43   : > { %282 = vst [vmem:[#allocation2 + $0x90] sm:$0xff] %v281_v12  ;;  %284 = vst [vmem:[#allocation2 + $0x98] sm:$0xff] %v283_v13  ;;  %v287_v15 = vld [vmem:[%s3934_s29 + $0xb0] sm:$0xff]  ;;  %v289_v16 = vld [vmem:[%s3934_s29 + $0xc0] sm:$0xff] }
  0x44   : > { %286 = vst [vmem:[#allocation2 + $0xa8] sm:$0xff] %v285_v14  ;;  %v291_v17 = vld [vmem:[%s3934_s29 + $0xc8] sm:$0xff]  ;;  %288 = vst [vmem:[#allocation2 + $0xb0] sm:$0xff] %v287_v15  ;;  %v293_v18 = vld [vmem:[%s3934_s29 + $0xd8] sm:$0xff] }
  0x45   : > { %290 = vst [vmem:[#allocation2 + $0xc0] sm:$0xff] %v289_v16  ;;  %292 = vst [vmem:[#allocation2 + $0xc8] sm:$0xff] %v291_v17  ;;  %v295_v19 = vld [vmem:[%s3934_s29 + $0xe0] sm:$0xff]  ;;  %v297_v20 = vld [vmem:[%s3934_s29 + $0xf0] sm:$0xff] }
  0x46   : > { %294 = vst [vmem:[#allocation2 + $0xd8] sm:$0xff] %v293_v18  ;;  %296 = vst [vmem:[#allocation2 + $0xe0] sm:$0xff] %v295_v19  ;;  %v299_v21 = vld [vmem:[%s3934_s29 + $0xf8] sm:$0xff]  ;;  %v301_v22 = vld [vmem:[%s3934_s29 + $0x108] sm:$0xff] }
  0x47   : > { %298 = vst [vmem:[#allocation2 + $0xf0] sm:$0xff] %v297_v20  ;;  %v303_v23 = vld [vmem:[%s3934_s29 + $0x110] sm:$0xff]  ;;  %300 = vst [vmem:[#allocation2 + $0xf8] sm:$0xff] %v299_v21  ;;  %v2334_v25 = vld [vmem:[%s3934_s29 + $0x28] sm:$0xf] }
  0x48   : > { %302 = vst [vmem:[#allocation2 + $0x108] sm:$0xff] %v301_v22  ;;  %304 = vst [vmem:[#allocation2 + $0x110] sm:$0xff] %v303_v23  ;;  %v2333_v24 = vld [vmem:[%s3934_s29 + $0x10] sm:$0xf]  ;;  %v2335_v26 = vld [vmem:[%s3934_s29 + $0x40] sm:$0xf] }
  0x49   : > { %315 = vst [vmem:[#allocation2 + $0x10] sm:$0xf] %v2333_v24  ;;  %317 = vst [vmem:[#allocation2 + $0x28] sm:$0xf] %v2334_v25  ;;  %v2336_v27 = vld [vmem:[%s3934_s29 + $0x58] sm:$0xf] }
  0x4a   : > { %319 = vst [vmem:[#allocation2 + $0x40] sm:$0xf] %v2335_v26  ;;  %v2337_v28 = vld [vmem:[%s3934_s29 + $0x70] sm:$0xf]  ;;  %v2338_v29 = vld [vmem:[%s3934_s29 + $0x88] sm:$0xf] }
  0x4b   : > { %321 = vst [vmem:[#allocation2 + $0x58] sm:$0xf] %v2336_v27  ;;  %323 = vst [vmem:[#allocation2 + $0x70] sm:$0xf] %v2337_v28  ;;  %v2339_v30 = vld [vmem:[%s3934_s29 + $0xa0] sm:$0xf] }
  0x4c   : > { %325 = vst [vmem:[#allocation2 + $0x88] sm:$0xf] %v2338_v29  ;;  %v2340_v31 = vld [vmem:[%s3934_s29 + $0xb8] sm:$0xf]  ;;  %v2341_v32 = vld [vmem:[%s3934_s29 + $0xd0] sm:$0xf] }
  0x4d   : > { %327 = vst [vmem:[#allocation2 + $0xa0] sm:$0xf] %v2339_v30  ;;  %329 = vst [vmem:[#allocation2 + $0xb8] sm:$0xf] %v2340_v31  ;;  %v2342_v33 = vld [vmem:[%s3934_s29 + $0xe8] sm:$0xf] }
  0x4e   : > { %331 = vst [vmem:[#allocation2 + $0xd0] sm:$0xf] %v2341_v32  ;;  %v2343_v34 = vld [vmem:[%s3934_s29 + $0x100] sm:$0xf]  ;;  %v2344_v35 = vld [vmem:[%s3934_s29 + $0x118] sm:$0xf] }
  0x4f   : > { %333 = vst [vmem:[#allocation2 + $0xe8] sm:$0xf] %v2342_v33  ;;  %335 = vst [vmem:[#allocation2 + $0x100] sm:$0xf] %v2343_v34 }
  0x50   : > { %337 = vst [vmem:[#allocation2 + $0x118] sm:$0xf] %v2344_v35 }
  0x51   : > { %341 = vsyncadd [#allocation3], 3840 }
  0x52   : > { %3766 = dma.done.wait [#allocation3], 3840 }
  0x53   : > { %3767 = vsyncadd [#allocation3], 4294963456  ;;  %v395_v36 = vld [vmem:[#allocation4 + $0x80] sm:$0xff]  ;;  %v396_v37 = vld [vmem:[#allocation4 + $0x88] sm:$0xff]  ;;  %s2354_s21 = sshll.u32 %s3790_s18, 11  ;;  %s2181_s22 = sshll.u32 %s3974_s30, 4  ;;  %s4261_s22 = int_to_ptr.vmem [resolvable:$true] %s2181_s22 }
  0x54   : > { %v1107_v38 = vld [vmem:[#allocation4 + $0x200] sm:$0xff]  ;;  %v3147_v39 = vpack.c.bf16 %v396_v37, %v395_v36  ;;  %v1108_v40 = vld [vmem:[#allocation4 + $0x208] sm:$0xff]  ;;  %v397_v41 = vld [vmem:[#allocation4 + $0x90] sm:$0xff]  ;;  %s4259_s5 = scalar_lea.hbm %s4372_s3, %s2354_s21  ;;  %s2161_s7 = scalar_lea.sflag [#allocation6], %s3926_s8 }
  0x55   : > { %v398_v42 = vld [vmem:[#allocation4 + $0x98] sm:$0xff]  ;;  %v3275_v43 = vpack.c.bf16 %v1108_v40, %v1107_v38  ;;  %v1109_v45 = vld [vmem:[#allocation4 + $0x210] sm:$0xff]  ;;  %v399_v47 = vld [vmem:[#allocation4 + $0xa0] sm:$0xff]  ;;  %s3682_s9 = scalar_lea.vmem %s4261_s22, 2048  ;;  %p4385_p8 = scmp.ne.s32.totalorder %s4378_s25, 0 }
  0x56   : > { %v3151_v44 = vpack.c.bf16 %v398_v42, %v397_v41  ;;  %v1110_v46 = vld [vmem:[#allocation4 + $0x218] sm:$0xff]  ;;  %3148 = vmatprep.subr.bf16.mxu1 %v3147_v39  ;;  %v400_v49 = vld [vmem:[#allocation4 + $0xa8] sm:$0xff]  ;;  %v1111_v50 = vld [vmem:[#allocation4 + $0x220] sm:$0xff]  ;;  %p3683_p4 = scmp.ne.s32.totalorder %s4261_s22, %s3682_s9  ;;  %s3803_s10 = smov [#allocation7]  }
  0x57   : > { %v3279_v48 = vpack.c.bf16 %v1110_v46, %v1109_v45  ;;  %v1112_v51 = vld [vmem:[#allocation4 + $0x228] sm:$0xff]  ;;  %3276 = vmatprep.subr.bf16.mxu0 %v3275_v43  ;;  %3150 = vmatpush3.bf16.msra.mxu1 %v3147_v39  ;;  %v3155_v52 = vpack.c.bf16 %v400_v49, %v399_v47  ;;  %v401_v54 = vld [vmem:[#allocation4 + $0xb0] sm:$0xff]  ;;  %v402_v55 = vld [vmem:[#allocation4 + $0xb8] sm:$0xff]  ;;  %s3686_s11 = sshll.u32 %s3803_s10, 4  ;;  %s3687_s11 = int_to_ptr.vmem [resolvable:$false] %s3686_s11 }
  0x58   : > { %3278 = vmatpush3.bf16.msra.mxu0 %v3275_v43  ;;  %3152 = vmatprep.subr.bf16.mxu1 %v3151_v44  ;;  %v3283_v53 = vpack.c.bf16 %v1112_v51, %v1111_v50  ;;  %v1113_v56 = vld [vmem:[#allocation4 + $0x230] sm:$0xff]  ;;  %v1114_v57 = vld [vmem:[#allocation4 + $0x238] sm:$0xff]  ;;  %v3159_v58 = vpack.c.bf16 %v402_v55, %v401_v54  ;;  %v403_v60 = vld [vmem:[#allocation4 + $0xc0] sm:$0xff]  ;;  %p3684_p10 = pnand %p3683_p4, %p4385_p8  ;;  %s3688_s6 = scalar_lea.vmem %s3687_s11, 4096 }
  0x59   : > { %3280 = vmatprep.subr.bf16.mxu0 %v3279_v48  ;;  %v3287_v59 = vpack.c.bf16 %v1114_v57, %v1113_v56  ;;  %v404_v61 = vld [vmem:[#allocation4 + $0xc8] sm:$0xff]  ;;  %v1115_v63 = vld [vmem:[#allocation4 + $0x240] sm:$0xff]  ;;  %v3980_v1 = vld [vmem:[#allocation2 + $0x32] sm:$0xff]  ;;  %p3689_p13 = scmp.lt.s32.totalorder %s4261_s22, %s3687_s11  ;;  %p3690_p1 = scmp.lt.s32.totalorder %s3688_s6, %s3682_s9 }
  0x5a   : > { %v378_v62 = vld [vmem:[#allocation2 + $0x2] sm:$0xff]  ;;  %2899 = vmatprep.mubr.f32.mxu0 %v3980_v1  ;;  %v3163_v2 = vpack.c.bf16 %v404_v61, %v403_v60  ;;  %v405_v4 = vld [vmem:[#allocation4 + $0xd0] sm:$0xff]  ;;  %v406_v5 = vld [vmem:[#allocation4 + $0xd8] sm:$0xff]  ;;  %p3685_p11 = pneg %p3684_p10 }
  0x5b   : > { %3154 = vmatpush3.bf16.msra.mxu1 %v3151_v44  ;;  %v1116_v0 = vld [vmem:[#allocation4 + $0x248] sm:$0xff]  ;;  %2675 = vmatprep.mubr.f32.mxu1 %v378_v62  ;;  %v1117_v6 = vld [vmem:[#allocation4 + $0x250] sm:$0xff]  ;;  %v1118_v7 = vld [vmem:[#allocation4 + $0x258] sm:$0xff]  ;;  %v3167_v8 = vpack.c.bf16 %v406_v5, %v405_v4  ;;  %p3691_p3 = por %p3690_p1, %p3689_p13 }
  0x5c   : > { %3282 = vmatpush3.bf16.msra.mxu0 %v3279_v48  ;;  %3156 = vmatprep.subr.bf16.mxu1 %v3155_v52  ;;  %v3291_v3 = vpack.c.bf16 %v1116_v0, %v1115_v63  ;;  %v3295_v9 = vpack.c.bf16 %v1118_v7, %v1117_v6  ;;  %v407_v10 = vld [vmem:[#allocation4 + $0xe0] sm:$0xff]  ;;  %v408_v11 = vld [vmem:[#allocation4 + $0xe8] sm:$0xff]  ;;  %v409_v16 = vld [vmem:[#allocation4 + $0xf0] sm:$0xff] }
  0x5d   : > { %3284 = vmatprep.subr.bf16.mxu0 %v3283_v53  ;;  %v1119_v12 = vld [vmem:[#allocation4 + $0x260] sm:$0xff]  ;;  %v1120_v13 = vld [vmem:[#allocation4 + $0x268] sm:$0xff]  ;;  %v3171_v14 = vpack.c.bf16 %v408_v11, %v407_v10  ;;  %v410_v17 = vld [vmem:[#allocation4 + $0xf8] sm:$0xff]  ;;  %p3692_p5 = pnand %p3691_p3, %p3685_p11 }
  0x5e   : > { %v3299_v15 = vpack.c.bf16 %v1120_v13, %v1119_v12  ;;  %v1121_v18 = vld [vmem:[#allocation4 + $0x270] sm:$0xff]  ;;  %v1122_v19 = vld [vmem:[#allocation4 + $0x278] sm:$0xff]  ;;  %v3175_v20 = vpack.c.bf16 %v410_v17, %v409_v16  ;;  %v362_v22 = vld [vmem:[#allocation4] sm:$0xff] }
  0x5f   : > { %3158 = vmatpush3.bf16.msra.mxu1 %v3155_v52  ;;  %v3303_v21 = vpack.c.bf16 %v1122_v19, %v1121_v18  ;;  %v363_v23 = vld [vmem:[#allocation4 + $0x8] sm:$0xff]  ;;  %v1301_v24 = vld [vmem:[#allocation4 + $0x280] sm:$0xff]  ;;  %v364_v28 = vld [vmem:[#allocation4 + $0x10] sm:$0xff] }
  0x60   : > { %3286 = vmatpush3.bf16.msra.mxu0 %v3283_v53  ;;  %3160 = vmatprep.subr.bf16.mxu1 %v3159_v58  ;;  %v1302_v25 = vld [vmem:[#allocation4 + $0x288] sm:$0xff]  ;;  %v3179_v26 = vpack.c.bf16 %v363_v23, %v362_v22  ;;  %v365_v29 = vld [vmem:[#allocation4 + $0x18] sm:$0xff]  ;;  %v1303_v31 = vld [vmem:[#allocation4 + $0x290] sm:$0xff] }
  0x61   : > { %3288 = vmatprep.subr.bf16.mxu0 %v3287_v59  ;;  %v3307_v27 = vpack.c.bf16 %v1302_v25, %v1301_v24  ;;  %v379_v30 = vld [vmem:[#allocation2 + $0xa] sm:$0xff]  ;;  %v1304_v32 = vld [vmem:[#allocation4 + $0x298] sm:$0xff]  ;;  %v3183_v35 = vpack.c.bf16 %v365_v29, %v364_v28  ;;  %v366_v38 = vld [vmem:[#allocation4 + $0x20] sm:$0xff] }
  0x62   : > { %v1091_v33 = vld [vmem:[#allocation2 + $0x3a] sm:$0xff]  ;;  %v1092_v36 = vld [vmem:[#allocation2 + $0x4a] sm:$0xff]  ;;  %v3311_v37 = vpack.c.bf16 %v1304_v32, %v1303_v31  ;;  %v381_v40 = vld [vmem:[#allocation2 + $0x22] sm:$0xff] }
  0x63   : > { %3162 = vmatpush3.bf16.msra.mxu1 %v3159_v58  ;;  %v380_v34 = vld [vmem:[#allocation2 + $0x1a] sm:$0xff]  ;;  %v367_v39 = vld [vmem:[#allocation4 + $0x28] sm:$0xff]  ;;  %v1093_v43 = vld [vmem:[#allocation2 + $0x52] sm:$0xff] }
  0x64   : > { %3290 = vmatpush3.bf16.msra.mxu0 %v3287_v59  ;;  %3164 = vmatprep.subr.bf16.mxu1 %v3163_v2  ;;  %v1305_v41 = vld [vmem:[#allocation4 + $0x2a0] sm:$0xff]  ;;  %v1306_v42 = vld [vmem:[#allocation4 + $0x2a8] sm:$0xff]  ;;  %v3187_v44 = vpack.c.bf16 %v367_v39, %v366_v38  ;;  %v368_v47 = vld [vmem:[#allocation4 + $0x30] sm:$0xff] }
  0x65   : > { %3292 = vmatprep.subr.bf16.mxu0 %v3291_v3  ;;  %v3983_v45 = vld [vmem:[#allocation2 + $0x62] sm:$0xff]  ;;  %v3315_v46 = vpack.c.bf16 %v1306_v42, %v1305_v41  ;;  %v369_v48 = vld [vmem:[#allocation4 + $0x38] sm:$0xff]  ;;  %v1307_v49 = vld [vmem:[#allocation4 + $0x2b0] sm:$0xff] }
  0x66   : > { %v1308_v50 = vld [vmem:[#allocation4 + $0x2b8] sm:$0xff]  ;;  %v3986_v51 = vld [vmem:[#allocation2 + $0x6a] sm:$0xff]  ;;  %v3191_v52 = vpack.c.bf16 %v369_v48, %v368_v47  ;;  %v370_v55 = vld [vmem:[#allocation4 + $0x40] sm:$0xff] }
  0x67   : > { %3166 = vmatpush3.bf16.msra.mxu1 %v3163_v2  ;;  %v3989_v53 = vld [vmem:[#allocation2 + $0x7a] sm:$0xff]  ;;  %v3319_v54 = vpack.c.bf16 %v1308_v50, %v1307_v49  ;;  %v371_v56 = vld [vmem:[#allocation4 + $0x48] sm:$0xff]  ;;  %v3995_v61 = vld [vmem:[#allocation2 + $0x92] sm:$0xff] }
  0x68   : > { %3294 = vmatpush3.bf16.msra.mxu0 %v3291_v3  ;;  %3168 = vmatprep.subr.bf16.mxu1 %v3167_v8  ;;  %v1309_v57 = vld [vmem:[#allocation4 + $0x2c0] sm:$0xff]  ;;  %v1310_v58 = vld [vmem:[#allocation4 + $0x2c8] sm:$0xff]  ;;  %v3195_v60 = vpack.c.bf16 %v371_v56, %v370_v55  ;;  %v372_v63 = vld [vmem:[#allocation4 + $0x50] sm:$0xff] }
  0x69   : > { %3296 = vmatprep.subr.bf16.mxu0 %v3295_v9  ;;  %v3992_v59 = vld [vmem:[#allocation2 + $0x82] sm:$0xff]  ;;  %v3323_v62 = vpack.c.bf16 %v1310_v58, %v1309_v57  ;;  %v373_v0 = vld [vmem:[#allocation4 + $0x58] sm:$0xff]  ;;  %v4003_v5 = vld [vmem:[#allocation2 + $0xaa] sm:$0xff] }
  0x6a   : > { %v1312_v2 = vld [vmem:[#allocation4 + $0x2d8] sm:$0xff]  ;;  %v3199_v4 = vpack.c.bf16 %v373_v0, %v372_v63  ;;  %v374_v7 = vld [vmem:[#allocation4 + $0x60] sm:$0xff]  ;;  %v1314_v10 = vld [vmem:[#allocation4 + $0x2e8] sm:$0xff] }
  0x6b   : > { %3170 = vmatpush3.bf16.msra.mxu1 %v3167_v8  ;;  %v3999_v3 = vld [vmem:[#allocation2 + $0x9a] sm:$0xff]  ;;  %v375_v8 = vld [vmem:[#allocation4 + $0x68] sm:$0xff]  ;;  %v4007_v11 = vld [vmem:[#allocation2 + $0xb2] sm:$0xff] }
  0x6c   : > { %3298 = vmatpush3.bf16.msra.mxu0 %v3295_v9  ;;  %3172 = vmatprep.subr.bf16.mxu1 %v3171_v14  ;;  %v1313_v9 = vld [vmem:[#allocation4 + $0x2e0] sm:$0xff]  ;;  %v3203_v12 = vpack.c.bf16 %v375_v8, %v374_v7  ;;  %v377_v16 = vld [vmem:[#allocation4 + $0x78] sm:$0xff]  ;;  %v1315_v17 = vld [vmem:[#allocation4 + $0x2f0] sm:$0xff] }
  0x6d   : > { %3300 = vmatprep.subr.bf16.mxu0 %v3299_v15  ;;  %v4011_v13 = vld [vmem:[#allocation2 + $0xc2] sm:$0xff]  ;;  %v1316_v18 = vld [vmem:[#allocation4 + $0x2f8] sm:$0xff]  ;;  %v4015_v19 = vld [vmem:[#allocation2 + $0xca] sm:$0xff] }
  0x6e   : > { %v3335_v22 = vpack.c.bf16 %v1316_v18, %v1315_v17  ;;  %v718_v23 = vld [vmem:[#allocation4 + $0x100] sm:$0xff]  ;;  %v719_v24 = vld [vmem:[#allocation4 + $0x108] sm:$0xff]  ;;  %v720_v32 = vld [vmem:[#allocation4 + $0x110] sm:$0xff] }
  0x6f   : > { %3174 = vmatpush3.bf16.msra.mxu1 %v3171_v14  ;;  %v3331_v14 = vpack.c.bf16 %v1314_v10, %v1313_v9  ;;  %v1496_v25 = vld [vmem:[#allocation4 + $0x300] sm:$0xff]  ;;  %v3211_v29 = vpack.c.bf16 %v719_v24, %v718_v23  ;;  %v348_v38 = vld [vmem:[#allocation2 + $0x18] sm:$0xff]  ;;  %v1501_v47 = vld [vmem:[#allocation4 + $0x328] sm:$0xff] }
  0x70   : > { %3302 = vmatpush3.bf16.msra.mxu0 %v3299_v15  ;;  %3176 = vmatprep.subr.bf16.mxu1 %v3175_v20  ;;  %v376_v15 = vld [vmem:[#allocation4 + $0x70] sm:$0xff]  ;;  %v346_v28 = vld [vmem:[#allocation2] sm:$0xff]  ;;  %v725_v56 = vld [vmem:[#allocation4 + $0x138] sm:$0xff] }
  0x71   : > { %3304 = vmatprep.subr.bf16.mxu0 %v3303_v21  ;;  %v722_v42 = vld [vmem:[#allocation4 + $0x120] sm:$0xff]  ;;  %v4036_v48 = vld [vmem:[#allocation2 + $0x54] sm:$0xff]  ;;  %v4050_v63 = vld [vmem:[#allocation2 + $0x48] sm:$0xff] }
  0x72   : > { %v4039_v49 = vld [vmem:[#allocation2 + $0x30] sm:$0xff]  ;;  %v4044_v57 = vld [vmem:[#allocation2 + $0x38] sm:$0xff]  ;;  %v1504_v8 = vld [vmem:[#allocation4 + $0x340] sm:$0xff] }
  0x73   : > { %3178 = vmatpush3.bf16.msra.mxu1 %v3175_v20  ;;  %v3207_v20 = vpack.c.bf16 %v377_v16, %v376_v15  ;;  %v724_v55 = vld [vmem:[#allocation4 + $0x130] sm:$0xff]  ;;  %v1505_v9 = vld [vmem:[#allocation4 + $0x348] sm:$0xff]  ;;  %v729_v18 = vld [vmem:[#allocation4 + $0x158] sm:$0xff] }
  0x74   : > { %3306 = vmatpush3.bf16.msra.mxu0 %v3303_v21  ;;  %3180 = vmatprep.subr.bf16.mxu1 %v3179_v26  ;;  %v4019_v21 = vld [vmem:[#allocation2 + $0xda] sm:$0xff]  ;;  %v1502_v58 = vld [vmem:[#allocation4 + $0x330] sm:$0xff]  ;;  %v3223_v0 = vpack.c.bf16 %v725_v56, %v724_v55  ;;  %v4059_v10 = vld [vmem:[#allocation2 + $0x84] sm:$0xff]  ;;  %v3355_v16 = vpack.c.bf16 %v1505_v9, %v1504_v8 }
  0x75   : > { %3308 = vmatprep.subr.bf16.mxu0 %v3307_v27  ;;  %v4056_v7 = vld [vmem:[#allocation2 + $0x50] sm:$0xff]  ;;  %v1507_v23 = vld [vmem:[#allocation4 + $0x358] sm:$0xff]  ;;  %v4098_v55 = vld [vmem:[#allocation2 + $0xa8] sm:$0xff] }
  0x76   : > { %2676 = vmatmul.mubr.f32.vlgmr.msra.gmra.mrb[0].mxu1 %v379_v30  ;;  %v4027_v30 = vld [vmem:[#allocation2 + $0x34] sm:$0xff]  ;;  %v4071_v24 = vld [vmem:[#allocation2 + $0x9c] sm:$0xff]  ;;  %v1691_v8 = vld [vmem:[#allocation4 + $0x388] sm:$0xff] }
  0x77   : > { %2900 = vmatmul.mubr.f32.vlgmr.msra.gmra.mrb[0].mxu0 %v1091_v33  ;;  %3182 = vmatpush3.bf16.msra.mxu1 %v3179_v26  ;;  %v1497_v26 = vld [vmem:[#allocation4 + $0x308] sm:$0xff]  ;;  %v4065_v15 = vld [vmem:[#allocation2 + $0x94] sm:$0xff] }
  0x78   : > { %3310 = vmatpush3.bf16.msra.mxu0 %v3307_v27  ;;  %2678 = vmatprep.mubr.f32.mxu1 %v380_v34  ;;  %v4023_v27 = vld [vmem:[#allocation2 + $0xe2] sm:$0xff]  ;;  %v3339_v31 = vpack.c.bf16 %v1497_v26, %v1496_v25  ;;  %v728_v17 = vld [vmem:[#allocation4 + $0x150] sm:$0xff]  ;;  %v4074_v25 = vld [vmem:[#allocation2 + $0x78] sm:$0xff] }
  0x79   : > { %2902 = vmatprep.mubr.f32.mxu0 %v1092_v36  ;;  %3184 = vmatprep.subr.bf16.mxu1 %v3183_v35  ;;  %v347_v34 = vld [vmem:[#allocation2 + $0x8] sm:$0xff]  ;;  %v3231_v26 = vpack.c.bf16 %v729_v18, %v728_v17  ;;  %v915_v18 = vld [vmem:[#allocation4 + $0x190] sm:$0xff] }
  0x7a   : > { %2679 = vmatmul.mubr.f32.gmra.mrb[2].mxu1 %v381_v40  ;;  %3312 = vmatprep.subr.bf16.mxu0 %v3311_v37  ;;  %v4033_v40 = vld [vmem:[#allocation2 + $0x4c] sm:$0xff]  ;;  %v4107_v9 = vld [vmem:[#allocation2 + $0xe4] sm:$0xff] }
  0x7b   : > { %2903 = vmatmul.mubr.f32.gmra.mrb[2].mxu0 %v1093_v43  ;;  %3186 = vmatpush3.bf16.msra.mxu1 %v3183_v35  ;;  %v1498_v35 = vld [vmem:[#allocation4 + $0x310] sm:$0xff] }
  0x7c   : > { %3314 = vmatpush3.bf16.msra.mxu0 %v3311_v37  ;;  %2681 = vmatprep.mubr.f32.mxu1 %v3980_v1  ;;  %v1311_v1 = vld [vmem:[#allocation4 + $0x2d0] sm:$0xff]  ;;  %v4030_v37 = vld [vmem:[#allocation2 + $0x3c] sm:$0xff] }
  0x7d   : > { %2905 = vmatprep.mubr.f32.mxu0 %v3983_v45  ;;  %3188 = vmatprep.subr.bf16.mxu1 %v3187_v44  ;;  %v3327_v6 = vpack.c.bf16 %v1312_v2, %v1311_v1  ;;  %v4053_v1 = vld [vmem:[#allocation2 + $0x7c] sm:$0xff] }
  0x7e   : > { %2682 = vmatmul.mubr.f32.gmra.mrb[4].mxu1 %v1091_v33  ;;  %3316 = vmatprep.subr.bf16.mxu0 %v3315_v46  ;;  %v721_v33 = vld [vmem:[#allocation4 + $0x118] sm:$0xff] }
  0x7f   : > { %2906 = vmatmul.mubr.f32.gmra.mrb[4].mxu0 %v3986_v51  ;;  %3190 = vmatpush3.bf16.msra.mxu1 %v3187_v44  ;;  %v3215_v39 = vpack.c.bf16 %v721_v33, %v720_v32  ;;  %v349_v44 = vld [vmem:[#allocation2 + $0x20] sm:$0xff]  ;;  %v731_v32 = vld [vmem:[#allocation4 + $0x168] sm:$0xff] }
  0x80   : > { %3318 = vmatpush3.bf16.msra.mxu0 %v3315_v46  ;;  %2684 = vmatprep.mubr.f32.mxu1 %v1092_v36  ;;  %v1499_v36 = vld [vmem:[#allocation4 + $0x318] sm:$0xff]  ;;  %v1500_v46 = vld [vmem:[#allocation4 + $0x320] sm:$0xff] }
  0x81   : > { %2908 = vmatprep.mubr.f32.mxu0 %v3989_v53  ;;  %3192 = vmatprep.subr.bf16.mxu1 %v3191_v52  ;;  %v3343_v41 = vpack.c.bf16 %v1499_v36, %v1498_v35  ;;  %v4080_v33 = vld [vmem:[#allocation2 + $0x80] sm:$0xff]  ;;  %v1509_v35 = vld [vmem:[#allocation4 + $0x368] sm:$0xff]  ;;  %v4083_v36 = vld [vmem:[#allocation2 + $0xb4] sm:$0xff] }
  0x82   : > { %2685 = vmatmul.mubr.f32.gmra.mrb[6].mxu1 %v1093_v43  ;;  %3320 = vmatprep.subr.bf16.mxu0 %v3319_v54  ;;  %v723_v43 = vld [vmem:[#allocation4 + $0x128] sm:$0xff] }
  0x83   : > { %2909 = vmatmul.mubr.f32.gmra.mrb[6].mxu0 %v3992_v59  ;;  %3194 = vmatpush3.bf16.msra.mxu1 %v3191_v52  ;;  %v3219_v50 = vpack.c.bf16 %v723_v43, %v722_v42  ;;  %v4041_v52 = vld [vmem:[#allocation2 + $0x64] sm:$0xff]  ;;  %v732_v43 = vld [vmem:[#allocation4 + $0x170] sm:$0xff] }
  0x84   : > { %3322 = vmatpush3.bf16.msra.mxu0 %v3319_v54  ;;  %2687 = vmatprep.mubr.f32.mxu1 %v3983_v45  ;;  %v3347_v54 = vpack.c.bf16 %v1501_v47, %v1500_v46  ;;  %v4092_v46 = vld [vmem:[#allocation2 + $0x98] sm:$0xff]  ;;  %v1510_v47 = vld [vmem:[#allocation4 + $0x370] sm:$0xff] }
  0x85   : > { %2911 = vmatprep.mubr.f32.mxu0 %v3995_v61  ;;  %3196 = vmatprep.subr.bf16.mxu1 %v3195_v60 }
  0x86   : > { %2688 = vmatmul.mubr.f32.gmra.mrb[8].mxu1 %v3986_v51  ;;  %3324 = vmatprep.subr.bf16.mxu0 %v3323_v62 }
  0x87   : > { %2912 = vmatmul.mubr.f32.gmra.mrb[8].mxu0 %v3999_v3  ;;  %3198 = vmatpush3.bf16.msra.mxu1 %v3195_v60  ;;  %v1503_v60 = vld [vmem:[#allocation4 + $0x338] sm:$0xff] }
  0x88   : > { %3326 = vmatpush3.bf16.msra.mxu0 %v3323_v62  ;;  %2690 = vmatprep.mubr.f32.mxu1 %v3989_v53  ;;  %v4047_v62 = vld [vmem:[#allocation2 + $0x6c] sm:$0xff]  ;;  %v3351_v2 = vpack.c.bf16 %v1503_v60, %v1502_v58  ;;  %v4101_v58 = vld [vmem:[#allocation2 + $0xdc] sm:$0xff] }
  0x89   : > { %2914 = vmatprep.mubr.f32.mxu0 %v4003_v5  ;;  %3200 = vmatprep.subr.bf16.mxu1 %v3199_v4 }
  0x8a   : > { %2691 = vmatmul.mubr.f32.gmra.mrb[10].mxu1 %v3992_v59  ;;  %3328 = vmatprep.subr.bf16.mxu0 %v3327_v6 }
  0x8b   : > { %2915 = vmatmul.mubr.f32.gmra.mrb[10].mxu0 %v4007_v11  ;;  %3202 = vmatpush3.bf16.msra.mxu1 %v3199_v4  ;;  %v726_v4 = vld [vmem:[#allocation4 + $0x140] sm:$0xff] }
  0x8c   : > { %3330 = vmatpush3.bf16.msra.mxu0 %v3327_v6  ;;  %2693 = vmatprep.mubr.f32.mxu1 %v3995_v61  ;;  %v727_v6 = vld [vmem:[#allocation4 + $0x148] sm:$0xff] }
  0x8d   : > { %2917 = vmatprep.mubr.f32.mxu0 %v4011_v13  ;;  %3204 = vmatprep.subr.bf16.mxu1 %v3203_v12 }
  0x8e   : > { %2694 = vmatmul.mubr.f32.gmra.mrb[12].mxu1 %v3999_v3  ;;  %3332 = vmatprep.subr.bf16.mxu0 %v3331_v14 }
  0x8f   : > { %2918 = vmatmul.mubr.f32.gmra.mrb[12].mxu0 %v4015_v19  ;;  %3206 = vmatpush3.bf16.msra.mxu1 %v3203_v12  ;;  %v4062_v12 = vld [vmem:[#allocation2 + $0x60] sm:$0xff] }
  0x90   : > { %3334 = vmatpush3.bf16.msra.mxu0 %v3331_v14  ;;  %2696 = vmatprep.mubr.f32.mxu1 %v4003_v5  ;;  %v3227_v14 = vpack.c.bf16 %v727_v6, %v726_v4  ;;  %v4104_v4 = vld [vmem:[#allocation2 + $0xb0] sm:$0xff]  ;;  %v1690_v6 = vld [vmem:[#allocation4 + $0x380] sm:$0xff] }
  0x91   : > { %2920 = vmatprep.mubr.f32.mxu0 %v4019_v21  ;;  %3208 = vmatprep.subr.bf16.mxu1 %v3207_v20  ;;  %v3371_v17 = vpack.c.bf16 %v1691_v8, %v1690_v6 }
  0x92   : > { %2697 = vmatmul.mubr.f32.gmra.mrb[14].mxu1 %v4007_v11  ;;  %3336 = vmatprep.subr.bf16.mxu0 %v3335_v22 }
  0x93   : > { %2921 = vmatmul.mubr.f32.gmra.mrb[14].mxu0 %v4023_v27  ;;  %3210 = vmatpush3.bf16.msra.mxu1 %v3207_v20  ;;  %v4068_v20 = vld [vmem:[#allocation2 + $0x68] sm:$0xff] }
  0x94   : > { %3338 = vmatpush3.bf16.msra.mxu0 %v3335_v22  ;;  %2731 = vmatprep.mubr.f32.mxu1 %v346_v28  ;;  %v1506_v22 = vld [vmem:[#allocation4 + $0x350] sm:$0xff] }
  0x95   : > { %2955 = vmatprep.mubr.f32.mxu0 %v4027_v30  ;;  %3212 = vmatprep.subr.bf16.mxu1 %v3211_v29  ;;  %v4077_v28 = vld [vmem:[#allocation2 + $0xac] sm:$0xff] }
  0x96   : > { %2732 = vmatmul.mubr.f32.vlgmr.msra.gmra.mrb[0].mxu1 %v347_v34  ;;  %3340 = vmatprep.subr.bf16.mxu0 %v3339_v31  ;;  %v1508_v34 = vld [vmem:[#allocation4 + $0x360] sm:$0xff] }
  0x97   : > { %2956 = vmatmul.mubr.f32.vlgmr.msra.gmra.mrb[0].mxu0 %v4030_v37  ;;  %3214 = vmatpush3.bf16.msra.mxu1 %v3211_v29  ;;  %v3359_v29 = vpack.c.bf16 %v1507_v23, %v1506_v22  ;;  %v3363_v42 = vpack.c.bf16 %v1509_v35, %v1508_v34  ;;  %v916_v22 = vld [vmem:[#allocation4 + $0x198] sm:$0xff]  ;;  %v702_v23 = vld [vmem:[#allocation2 + $0xc] sm:$0xff]  ;;  %v917_v35 = vld [vmem:[#allocation4 + $0x1a0] sm:$0xff] }
  0x98   : > { %3342 = vmatpush3.bf16.msra.mxu0 %v3339_v31  ;;  %2734 = vmatprep.mubr.f32.mxu1 %v348_v38  ;;  %v730_v31 = vld [vmem:[#allocation4 + $0x160] sm:$0xff]  ;;  %v4086_v38 = vld [vmem:[#allocation2 + $0x90] sm:$0xff] }
  0x99   : > { %2958 = vmatprep.mubr.f32.mxu0 %v4033_v40  ;;  %3216 = vmatprep.subr.bf16.mxu1 %v3215_v39 }
  0x9a   : > { %2735 = vmatmul.mubr.f32.gmra.mrb[2].mxu1 %v349_v44  ;;  %3344 = vmatprep.subr.bf16.mxu0 %v3343_v41  ;;  %v733_v44 = vld [vmem:[#allocation4 + $0x178] sm:$0xff] }
  0x9b   : > { %2959 = vmatmul.mubr.f32.gmra.mrb[2].mxu0 %v4036_v48  ;;  %3218 = vmatpush3.bf16.msra.mxu1 %v3215_v39  ;;  %v3235_v39 = vpack.c.bf16 %v731_v32, %v730_v31  ;;  %v3239_v56 = vpack.c.bf16 %v733_v44, %v732_v43  ;;  %v703_v31 = vld [vmem:[#allocation2 + $0x1c] sm:$0xff]  ;;  %v3247_v32 = vpack.c.bf16 %v916_v22, %v915_v18  ;;  %v1695_v44 = vld [vmem:[#allocation4 + $0x3a8] sm:$0xff] }
  0x9c   : > { %3346 = vmatpush3.bf16.msra.mxu0 %v3343_v41  ;;  %2737 = vmatprep.mubr.f32.mxu1 %v4039_v49  ;;  %v4089_v41 = vld [vmem:[#allocation2 + $0xc4] sm:$0xff] }
  0x9d   : > { %2961 = vmatprep.mubr.f32.mxu0 %v4041_v52  ;;  %3220 = vmatprep.subr.bf16.mxu1 %v3219_v50  ;;  %v1694_v43 = vld [vmem:[#allocation4 + $0x3a0] sm:$0xff]  ;;  %v1699_v18 = vld [vmem:[#allocation4 + $0x3c8] sm:$0xff] }
  0x9e   : > { %2738 = vmatmul.mubr.f32.gmra.mrb[4].mxu1 %v4044_v57  ;;  %3348 = vmatprep.subr.bf16.mxu0 %v3347_v54 }
  0x9f   : > { %2962 = vmatmul.mubr.f32.gmra.mrb[4].mxu0 %v4047_v62  ;;  %3222 = vmatpush3.bf16.msra.mxu1 %v3219_v50  ;;  %v1511_v50 = vld [vmem:[#allocation4 + $0x378] sm:$0xff] }
  0xa0   : > { %3350 = vmatpush3.bf16.msra.mxu0 %v3347_v54  ;;  %2740 = vmatprep.mubr.f32.mxu1 %v4050_v63  ;;  %v4095_v54 = vld [vmem:[#allocation2 + $0xcc] sm:$0xff]  ;;  %v3367_v60 = vpack.c.bf16 %v1511_v50, %v1510_v47  ;;  %v3379_v50 = vpack.c.bf16 %v1695_v44, %v1694_v43  ;;  %v4135_v44 = vld [vmem:[#allocation2 + $0xe0] sm:$0xff] }
  0xa1   : > { %2964 = vmatprep.mubr.f32.mxu0 %v4053_v1  ;;  %3224 = vmatprep.subr.bf16.mxu1 %v3223_v0  ;;  %v1703_v43 = vld [vmem:[#allocation4 + $0x3e8] sm:$0xff] }
  0xa2   : > { %2741 = vmatmul.mubr.f32.gmra.mrb[6].mxu1 %v4056_v7  ;;  %3352 = vmatprep.subr.bf16.mxu0 %v3351_v2 }
  0xa3   : > { %2965 = vmatmul.mubr.f32.gmra.mrb[6].mxu0 %v4059_v10  ;;  %3226 = vmatpush3.bf16.msra.mxu1 %v3223_v0  ;;  %v913_v0 = vld [vmem:[#allocation4 + $0x180] sm:$0xff] }
  0xa4   : > { %3354 = vmatpush3.bf16.msra.mxu0 %v3351_v2  ;;  %2743 = vmatprep.mubr.f32.mxu1 %v4062_v12  ;;  %v914_v2 = vld [vmem:[#allocation4 + $0x188] sm:$0xff] }
  0xa5   : > { %2967 = vmatprep.mubr.f32.mxu0 %v4065_v15  ;;  %3228 = vmatprep.subr.bf16.mxu1 %v3227_v14 }
  0xa6   : > { %2744 = vmatmul.mubr.f32.gmra.mrb[8].mxu1 %v4068_v20  ;;  %3356 = vmatprep.subr.bf16.mxu0 %v3355_v16 }
  0xa7   : > { %2968 = vmatmul.mubr.f32.gmra.mrb[8].mxu0 %v4071_v24  ;;  %3230 = vmatpush3.bf16.msra.mxu1 %v3227_v14  ;;  %v701_v14 = vld [vmem:[#allocation2 + $0x4] sm:$0xff] }
  0xa8   : > { %3358 = vmatpush3.bf16.msra.mxu0 %v3355_v16  ;;  %2746 = vmatprep.mubr.f32.mxu1 %v4074_v25  ;;  %v3243_v16 = vpack.c.bf16 %v914_v2, %v913_v0  ;;  %v1696_v0 = vld [vmem:[#allocation4 + $0x3b0] sm:$0xff]  ;;  %v1697_v2 = vld [vmem:[#allocation4 + $0x3b8] sm:$0xff] }
  0xa9   : > { %2970 = vmatprep.mubr.f32.mxu0 %v4077_v28  ;;  %3232 = vmatprep.subr.bf16.mxu1 %v3231_v26  ;;  %v3383_v8 = vpack.c.bf16 %v1697_v2, %v1696_v0  ;;  %v928_v0 = vld [vmem:[#allocation4 + $0x1f8] sm:$0xff]  ;;  %v1704_v2 = vld [vmem:[#allocation4 + $0x3f0] sm:$0xff] }
  0xaa   : > { %2747 = vmatmul.mubr.f32.gmra.mrb[10].mxu1 %v4080_v33  ;;  %3360 = vmatprep.subr.bf16.mxu0 %v3359_v29 }
  0xab   : > { %2971 = vmatmul.mubr.f32.gmra.mrb[10].mxu0 %v4083_v36  ;;  %3234 = vmatpush3.bf16.msra.mxu1 %v3231_v26  ;;  %v1692_v26 = vld [vmem:[#allocation4 + $0x390] sm:$0xff] }
  0xac   : > { %3362 = vmatpush3.bf16.msra.mxu0 %v3359_v29  ;;  %2749 = vmatprep.mubr.f32.mxu1 %v4086_v38  ;;  %v1693_v29 = vld [vmem:[#allocation4 + $0x398] sm:$0xff] }
  0xad   : > { %2973 = vmatprep.mubr.f32.mxu0 %v4089_v41  ;;  %3236 = vmatprep.subr.bf16.mxu1 %v3235_v39  ;;  %v3375_v34 = vpack.c.bf16 %v1693_v29, %v1692_v26  ;;  %v924_v26 = vld [vmem:[#allocation4 + $0x1d8] sm:$0xff]  ;;  %v1700_v29 = vld [vmem:[#allocation4 + $0x3d0] sm:$0xff] }
  0xae   : > { %2750 = vmatmul.mubr.f32.gmra.mrb[12].mxu1 %v4092_v46  ;;  %3364 = vmatprep.subr.bf16.mxu0 %v3363_v42 }
  0xaf   : > { %2974 = vmatmul.mubr.f32.gmra.mrb[12].mxu0 %v4095_v54  ;;  %3238 = vmatpush3.bf16.msra.mxu1 %v3235_v39  ;;  %v918_v39 = vld [vmem:[#allocation4 + $0x1a8] sm:$0xff] }
  0xb0   : > { %3366 = vmatpush3.bf16.msra.mxu0 %v3363_v42  ;;  %2752 = vmatprep.mubr.f32.mxu1 %v4098_v55  ;;  %v704_v42 = vld [vmem:[#allocation2 + $0x24] sm:$0xff]  ;;  %v3251_v47 = vpack.c.bf16 %v918_v39, %v917_v35 }
  0xb1   : > { %2976 = vmatprep.mubr.f32.mxu0 %v4101_v58  ;;  %3240 = vmatprep.subr.bf16.mxu1 %v3239_v56  ;;  %v925_v35 = vld [vmem:[#allocation4 + $0x1e0] sm:$0xff]  ;;  %v926_v39 = vld [vmem:[#allocation4 + $0x1e8] sm:$0xff] }
  0xb2   : > { %2753 = vmatmul.mubr.f32.gmra.mrb[14].mxu1 %v4104_v4  ;;  %3368 = vmatprep.subr.bf16.mxu0 %v3367_v60 }
  0xb3   : > { %2977 = vmatmul.mubr.f32.gmra.mrb[14].mxu0 %v4107_v9  ;;  %3242 = vmatpush3.bf16.msra.mxu1 %v3239_v56  ;;  %v919_v56 = vld [vmem:[#allocation4 + $0x1b0] sm:$0xff] }
  0xb4   : > { %3370 = vmatpush3.bf16.msra.mxu0 %v3367_v60  ;;  %2787 = vmatprep.mubr.f32.mxu1 %v701_v14  ;;  %v920_v60 = vld [vmem:[#allocation4 + $0x1b8] sm:$0xff]  ;;  %v921_v14 = vld [vmem:[#allocation4 + $0x1c0] sm:$0xff] }
  0xb5   : > { %3011 = vmatprep.mubr.f32.mxu0 %v4062_v12  ;;  %3244 = vmatprep.subr.bf16.mxu1 %v3243_v16  ;;  %v3255_v6 = vpack.c.bf16 %v920_v60, %v919_v56  ;;  %v927_v60 = vld [vmem:[#allocation4 + $0x1f0] sm:$0xff] }
  0xb6   : > { %2788 = vmatmul.mubr.f32.vlgmr.msra.gmra.mrb[0].mxu1 %v702_v23  ;;  %3372 = vmatprep.subr.bf16.mxu0 %v3371_v17  ;;  %v923_v23 = vld [vmem:[#allocation4 + $0x1d0] sm:$0xff] }
  0xb7   : > { %3012 = vmatmul.mubr.f32.vlgmr.msra.gmra.mrb[0].mxu0 %v4068_v20  ;;  %3246 = vmatpush3.bf16.msra.mxu1 %v3243_v16  ;;  %v922_v16 = vld [vmem:[#allocation4 + $0x1c8] sm:$0xff] }
  0xb8   : > { %3374 = vmatpush3.bf16.msra.mxu0 %v3371_v17  ;;  %2790 = vmatprep.mubr.f32.mxu1 %v703_v31  ;;  %v1698_v17 = vld [vmem:[#allocation4 + $0x3c0] sm:$0xff]  ;;  %v1701_v31 = vld [vmem:[#allocation4 + $0x3d8] sm:$0xff] }
  0xb9   : > { %3014 = vmatprep.mubr.f32.mxu0 %v4074_v25  ;;  %3248 = vmatprep.subr.bf16.mxu1 %v3247_v32  ;;  %v3387_v22 = vpack.c.bf16 %v1699_v18, %v1698_v17  ;;  %v1884_v18 = vld [vmem:[#allocation4 + $0x400] sm:$0xff] }
  0xba   : > { %2791 = vmatmul.mubr.f32.gmra.mrb[2].mxu1 %v704_v42  ;;  %3376 = vmatprep.subr.bf16.mxu0 %v3375_v34  ;;  %v1702_v42 = vld [vmem:[#allocation4 + $0x3e0] sm:$0xff] }
  0xbb   : > { %3015 = vmatmul.mubr.f32.gmra.mrb[2].mxu0 %v4080_v33  ;;  %3250 = vmatpush3.bf16.msra.mxu1 %v3247_v32  ;;  %v4131_v32 = vld [vmem:[#allocation2 + $0xd8] sm:$0xff]  ;;  %v3395_v56 = vpack.c.bf16 %v1703_v43, %v1702_v42 }
  0xbc   : > { %3378 = vmatpush3.bf16.msra.mxu0 %v3375_v34  ;;  %2793 = vmatprep.mubr.f32.mxu1 %v4027_v30  ;;  %v3259_v30 = vpack.c.bf16 %v922_v16, %v921_v14  ;;  %v3391_v34 = vpack.c.bf16 %v1701_v31, %v1700_v29  ;;  %v3271_v14 = vpack.c.bf16 %v928_v0, %v927_v60  ;;  %v1493_v16 = vld [vmem:[#allocation2 + $0x108] sm:$0xff]  ;;  %v1887_v29 = vld [vmem:[#allocation4 + $0x418] sm:$0xff] }
  0xbd   : > { %3017 = vmatprep.mubr.f32.mxu0 %v4086_v38  ;;  %3252 = vmatprep.subr.bf16.mxu1 %v3251_v47 }
  0xbe   : > { %2794 = vmatmul.mubr.f32.gmra.mrb[4].mxu1 %v4030_v37  ;;  %3380 = vmatprep.subr.bf16.mxu0 %v3379_v50  ;;  %v4123_v37 = vld [vmem:[#allocation2 + $0xc0] sm:$0xff] }
  0xbf   : > { %3018 = vmatmul.mubr.f32.gmra.mrb[4].mxu0 %v4092_v46  ;;  %3254 = vmatpush3.bf16.msra.mxu1 %v3251_v47  ;;  %v3267_v47 = vpack.c.bf16 %v926_v39, %v925_v35 }
  0xc0   : > { %3382 = vmatpush3.bf16.msra.mxu0 %v3379_v50  ;;  %2796 = vmatprep.mubr.f32.mxu1 %v4033_v40  ;;  %v4127_v40 = vld [vmem:[#allocation2 + $0xc8] sm:$0xff]  ;;  %v1491_v50 = vld [vmem:[#allocation2 + $0xf0] sm:$0xff] }
  0xc1   : > { %3020 = vmatprep.mubr.f32.mxu0 %v4098_v55  ;;  %3256 = vmatprep.subr.bf16.mxu1 %v3255_v6 }
  0xc2   : > { %2797 = vmatmul.mubr.f32.gmra.mrb[6].mxu1 %v4036_v48  ;;  %3384 = vmatprep.subr.bf16.mxu0 %v3383_v8  ;;  %v3263_v48 = vpack.c.bf16 %v924_v26, %v923_v23  ;;  %v1886_v26 = vld [vmem:[#allocation4 + $0x410] sm:$0xff] }
  0xc3   : > { %3021 = vmatmul.mubr.f32.gmra.mrb[6].mxu0 %v4104_v4  ;;  %3258 = vmatpush3.bf16.msra.mxu1 %v3255_v6  ;;  %v1705_v6 = vld [vmem:[#allocation4 + $0x3f8] sm:$0xff]  ;;  %v3407_v31 = vpack.c.bf16 %v1887_v29, %v1886_v26 }
  0xc4   : > { %3386 = vmatpush3.bf16.msra.mxu0 %v3383_v8  ;;  %2799 = vmatprep.mubr.f32.mxu1 %v4041_v52  ;;  %v1492_v8 = vld [vmem:[#allocation2 + $0xf8] sm:$0xff]  ;;  %v3399_v17 = vpack.c.bf16 %v1705_v6, %v1704_v2 }
  0xc5   : > { %3023 = vmatprep.mubr.f32.mxu0 %v4123_v37  ;;  %3260 = vmatprep.subr.bf16.mxu1 %v3259_v30 }
  0xc6   : > { %2800 = vmatmul.mubr.f32.gmra.mrb[8].mxu1 %v4047_v62  ;;  %3388 = vmatprep.subr.bf16.mxu0 %v3387_v22 }
  0xc7   : > { %3024 = vmatmul.mubr.f32.gmra.mrb[8].mxu0 %v4127_v40  ;;  %3262 = vmatpush3.bf16.msra.mxu1 %v3259_v30  ;;  %v1885_v30 = vld [vmem:[#allocation4 + $0x408] sm:$0xff] }
  0xc8   : > { %3390 = vmatpush3.bf16.msra.mxu0 %v3387_v22  ;;  %2802 = vmatprep.mubr.f32.mxu1 %v4053_v1  ;;  %v1494_v22 = vld [vmem:[#allocation2 + $0x110] sm:$0xff]  ;;  %v3403_v23 = vpack.c.bf16 %v1885_v30, %v1884_v18  ;;  %v4199_v30 = vld [vmem:[%s4371_s2] ss:$0 sm:$0xff] }
  0xc9   : > { %3026 = vmatprep.mubr.f32.mxu0 %v4131_v32  ;;  %3264 = vmatprep.subr.bf16.mxu1 %v3263_v48 }
  0xca   : > { %2803 = vmatmul.mubr.f32.gmra.mrb[10].mxu1 %v4059_v10  ;;  %3392 = vmatprep.subr.bf16.mxu0 %v3391_v34 }
  0xcb   : > { %3027 = vmatmul.mubr.f32.gmra.mrb[10].mxu0 %v4135_v44  ;;  %3266 = vmatpush3.bf16.msra.mxu1 %v3263_v48  ;;  %v1888_v48 = vld [vmem:[#allocation4 + $0x420] sm:$0xff] }
  0xcc   : > { %3394 = vmatpush3.bf16.msra.mxu0 %v3391_v34  ;;  %2805 = vmatprep.mubr.f32.mxu1 %v4065_v15  ;;  %v1889_v34 = vld [vmem:[#allocation4 + $0x428] sm:$0xff] }
  0xcd   : > { %3029 = vmatprep.mubr.f32.mxu0 %v1491_v50  ;;  %3268 = vmatprep.subr.bf16.mxu1 %v3267_v47  ;;  %v3411_v35 = vpack.c.bf16 %v1889_v34, %v1888_v48 }
  0xce   : > { %2806 = vmatmul.mubr.f32.gmra.mrb[12].mxu1 %v4071_v24  ;;  %3396 = vmatprep.subr.bf16.mxu0 %v3395_v56 }
  0xcf   : > { %3030 = vmatmul.mubr.f32.gmra.mrb[12].mxu0 %v1492_v8  ;;  %3270 = vmatpush3.bf16.msra.mxu1 %v3267_v47 }
  0xd0   : > { %3398 = vmatpush3.bf16.msra.mxu0 %v3395_v56  ;;  %2808 = vmatprep.mubr.f32.mxu1 %v4077_v28 }
  0xd1   : > { %3032 = vmatprep.mubr.f32.mxu0 %v1493_v16  ;;  %3272 = vmatprep.subr.bf16.mxu1 %v3271_v14 }
  0xd2   : > { %2809 = vmatmul.mubr.f32.gmra.mrb[14].mxu1 %v4083_v36  ;;  %3400 = vmatprep.subr.bf16.mxu0 %v3399_v17 }
  0xd3   : > { %3033 = vmatmul.mubr.f32.gmra.mrb[14].mxu0 %v1494_v22  ;;  %3274 = vmatpush3.bf16.msra.mxu1 %v3271_v14 }
  0xd4   : > { %3402 = vmatpush3.bf16.msra.mxu0 %v3399_v17  ;;  %2843 = vmatprep.mubr.f32.mxu1 %v4039_v49  ;;  %v1891_v49 = vld [vmem:[#allocation4 + $0x438] sm:$0xff] }
  0xd5   : > { %3067 = vmatprep.mubr.f32.mxu0 %v3983_v45  ;;  %3404 = vmatprep.subr.bf16.mxu0 %v3403_v23  ;;  %v1890_v45 = vld [vmem:[#allocation4 + $0x430] sm:$0xff] }
  0xd6   : > { %2844 = vmatmul.mubr.f32.vlgmr.msra.gmra.mrb[0].mxu1 %v4044_v57  ;;  %3435 = vmatprep.subr.bf16.mxu1 %v3403_v23  ;;  %v1893_v57 = vld [vmem:[#allocation4 + $0x448] sm:$0xff] }
  0xd7   : > { %3068 = vmatmul.mubr.f32.vlgmr.msra.gmra.mrb[0].mxu0 %v3986_v51  ;;  %3443 = vmatpush3.bf16.msra.mxu1 %v3403_v23  ;;  %v3415_v51 = vpack.c.bf16 %v1891_v49, %v1890_v45 }
  0xd8   : > { %3406 = vmatpush3.bf16.msra.mxu0 %v3403_v23  ;;  %2846 = vmatprep.mubr.f32.mxu1 %v4050_v63  ;;  %v1895_v63 = vld [vmem:[#allocation4 + $0x458] sm:$0xff] }
  0xd9   : > { %3070 = vmatprep.mubr.f32.mxu0 %v3989_v53  ;;  %3408 = vmatprep.subr.bf16.mxu0 %v3407_v31  ;;  %v1892_v53 = vld [vmem:[#allocation4 + $0x440] sm:$0xff] }
  0xda   : > { %2847 = vmatmul.mubr.f32.gmra.mrb[2].mxu1 %v4056_v7  ;;  %3436 = vmatprep.subr.bf16.mxu1 %v3407_v31  ;;  %v1897_v7 = vld [vmem:[#allocation4 + $0x468] sm:$0xff] }
  0xdb   : > { %3071 = vmatmul.mubr.f32.gmra.mrb[2].mxu0 %v3992_v59  ;;  %3444 = vmatpush3.bf16.msra.mxu1 %v3407_v31  ;;  %v3419_v59 = vpack.c.bf16 %v1893_v57, %v1892_v53 }
  0xdc   : > { %3410 = vmatpush3.bf16.msra.mxu0 %v3407_v31  ;;  %2849 = vmatprep.mubr.f32.mxu1 %v4062_v12  ;;  %v1898_v12 = vld [vmem:[#allocation4 + $0x470] sm:$0xff] }
  0xdd   : > { %3073 = vmatprep.mubr.f32.mxu0 %v3995_v61  ;;  %3412 = vmatprep.subr.bf16.mxu0 %v3411_v35  ;;  %v1894_v61 = vld [vmem:[#allocation4 + $0x450] sm:$0xff] }
  0xde   : > { %2850 = vmatmul.mubr.f32.gmra.mrb[4].mxu1 %v4068_v20  ;;  %3437 = vmatprep.subr.bf16.mxu1 %v3411_v35  ;;  %v1899_v20 = vld [vmem:[#allocation4 + $0x478] sm:$0xff] }
  0xdf   : > { %3074 = vmatmul.mubr.f32.gmra.mrb[4].mxu0 %v3999_v3  ;;  %3445 = vmatpush3.bf16.msra.mxu1 %v3411_v35  ;;  %v3423_v3 = vpack.c.bf16 %v1895_v63, %v1894_v61 }
  0xe0   : > { %3414 = vmatpush3.bf16.msra.mxu0 %v3411_v35  ;;  %2852 = vmatprep.mubr.f32.mxu1 %v4074_v25  ;;  %v3431_v25 = vpack.c.bf16 %v1899_v20, %v1898_v12 }
  0xe1   : > { %3076 = vmatprep.mubr.f32.mxu0 %v4003_v5  ;;  %3416 = vmatprep.subr.bf16.mxu0 %v3415_v51  ;;  %v1896_v5 = vld [vmem:[#allocation4 + $0x460] sm:$0xff] }
  0xe2   : > { %2853 = vmatmul.mubr.f32.gmra.mrb[6].mxu1 %v4080_v33  ;;  %3438 = vmatprep.subr.bf16.mxu1 %v3415_v51  ;;  %v1688_v33 = vld [vmem:[#allocation2 + $0x112] sm:$0xff] }
  0xe3   : > { %3077 = vmatmul.mubr.f32.gmra.mrb[6].mxu0 %v4007_v11  ;;  %3446 = vmatpush3.bf16.msra.mxu1 %v3415_v51  ;;  %v3427_v11 = vpack.c.bf16 %v1897_v7, %v1896_v5 }
  0xe4   : > { %3418 = vmatpush3.bf16.msra.mxu0 %v3415_v51  ;;  %2855 = vmatprep.mubr.f32.mxu1 %v4086_v38  ;;  %v1880_v38 = vld [vmem:[#allocation2 + $0xfc] sm:$0xff] }
  0xe5   : > { %3079 = vmatprep.mubr.f32.mxu0 %v4011_v13  ;;  %3420 = vmatprep.subr.bf16.mxu0 %v3419_v59  ;;  %v1685_v13 = vld [vmem:[#allocation2 + $0xf2] sm:$0xff] }
  0xe6   : > { %2856 = vmatmul.mubr.f32.gmra.mrb[8].mxu1 %v4092_v46  ;;  %3439 = vmatprep.subr.bf16.mxu1 %v3419_v59 }
  0xe7   : > { %3080 = vmatmul.mubr.f32.gmra.mrb[8].mxu0 %v4015_v19  ;;  %3447 = vmatpush3.bf16.msra.mxu1 %v3419_v59  ;;  %v1686_v19 = vld [vmem:[#allocation2 + $0xfa] sm:$0xff] }
  0xe8   : > { %3422 = vmatpush3.bf16.msra.mxu0 %v3419_v59  ;;  %2858 = vmatprep.mubr.f32.mxu1 %v4098_v55 }
  0xe9   : > { %3082 = vmatprep.mubr.f32.mxu0 %v4019_v21  ;;  %3424 = vmatprep.subr.bf16.mxu0 %v3423_v3  ;;  %v1687_v21 = vld [vmem:[#allocation2 + $0x10a] sm:$0xff] }
  0xea   : > { %2859 = vmatmul.mubr.f32.gmra.mrb[10].mxu1 %v4104_v4  ;;  %3440 = vmatprep.subr.bf16.mxu1 %v3423_v3 }
  0xeb   : > { %3083 = vmatmul.mubr.f32.gmra.mrb[10].mxu0 %v4023_v27  ;;  %3448 = vmatpush3.bf16.msra.mxu1 %v3423_v3  ;;  %v1879_v27 = vld [vmem:[#allocation2 + $0xf4] sm:$0xff] }
  0xec   : > { %3426 = vmatpush3.bf16.msra.mxu0 %v3423_v3  ;;  %2861 = vmatprep.mubr.f32.mxu1 %v4123_v37 }
  0xed   : > { %3085 = vmatprep.mubr.f32.mxu0 %v1685_v13  ;;  %3428 = vmatprep.subr.bf16.mxu0 %v3427_v11 }
  0xee   : > { %2862 = vmatmul.mubr.f32.gmra.mrb[12].mxu1 %v4127_v40  ;;  %3441 = vmatprep.subr.bf16.mxu1 %v3427_v11 }
  0xef   : > { %3086 = vmatmul.mubr.f32.gmra.mrb[12].mxu0 %v1686_v19  ;;  %3449 = vmatpush3.bf16.msra.mxu1 %v3427_v11 }
  0xf0   : > { %3430 = vmatpush3.bf16.msra.mxu0 %v3427_v11  ;;  %2864 = vmatprep.mubr.f32.mxu1 %v4131_v32 }
  0xf1   : > { %3088 = vmatprep.mubr.f32.mxu0 %v1687_v21  ;;  %3432 = vmatprep.subr.bf16.mxu0 %v3431_v25 }
  0xf2   : > { %2865 = vmatmul.mubr.f32.gmra.mrb[14].mxu1 %v4135_v44  ;;  %3442 = vmatprep.subr.bf16.mxu1 %v3431_v25 }
  0xf3   : > { %3089 = vmatmul.mubr.f32.gmra.mrb[14].mxu0 %v1688_v33  ;;  %3450 = vmatpush3.bf16.msra.mxu1 %v3431_v25 }
  0xf4   : > { %3434 = vmatpush3.bf16.msra.mxu0 %v3431_v25  ;;  %3123 = vmatprep.mubr.f32.mxu0 %v4041_v52  ;;  %v1881_v52 = vld [vmem:[#allocation2 + $0x10c] sm:$0xff] }
  0xf5   : > { %3135 = vmatprep.mubr.f32.mxu1 %v4089_v41  ;;  %v1882_v41 = vld [vmem:[#allocation2 + $0x114] sm:$0xff] }
  0xf6   : > { %3136 = vmatmul.mubr.f32.vlgmr.msra.gmra.mrb[16].mxu1 %v4095_v54 }
  0xf7   : > { %3124 = vmatmul.mubr.f32.vlgmr.msra.gmra.mrb[0].mxu0 %v4047_v62  ;;  %3138 = vmatprep.mubr.f32.mxu1 %v4101_v58 }
  0xf8   : > { %3126 = vmatprep.mubr.f32.mxu0 %v4053_v1 }
  0xfa   : > { %3139 = vmatmul.mubr.f32.gmra.mrb[18].mxu1 %v4107_v9 }
  0xfb   : > { %3127 = vmatmul.mubr.f32.gmra.mrb[2].mxu0 %v4059_v10  ;;  %3141 = vmatprep.mubr.f32.mxu1 %v1879_v27 }
  0xfc   : > { %3129 = vmatprep.mubr.f32.mxu0 %v4065_v15 }
  0xfe   : > { %3142 = vmatmul.mubr.f32.gmra.mrb[20].mxu1 %v1880_v38 }
  0xff   : > { %3130 = vmatmul.mubr.f32.gmra.mrb[4].mxu0 %v4071_v24  ;;  %3144 = vmatprep.mubr.f32.mxu1 %v1881_v52 }
 0x100   : > { %3132 = vmatprep.mubr.f32.mxu0 %v4077_v28 }
 0x102   : > { %3145 = vmatmul.mubr.f32.gmra.mrb[22].mxu1 %v1882_v41 }
 0x103   : > { %3133 = vmatmul.mubr.f32.gmra.mrb[6].mxu0 %v4083_v36 }
 0x1a9   : > { %v2845_v62 = vpop.f32.mrb[0].mxu1 }
 0x1aa   : > { %v995_v1 = vpop.f32.mrb[1].mxu1 }
 0x1ad   : > { %v2848_v46 = vpop.f32.mrb[2].mxu1 }
 0x1ae   : > { %v1005_v54 = vpop.f32.mrb[3].mxu1 }
 0x1b1   : > { %v4184_v10 = vpop.f32.mrb[4].mxu1 }
 0x1b2   : > { %v4186_v55 = vpop.f32.mrb[5].mxu1 }
 0x1b5   : > { %v4188_v15 = vpop.f32.mrb[6].mxu1 }
 0x1b6   : > { %v4190_v58 = vpop.f32.mrb[7].mxu1 }
 0x1b9   : > { %v2857_v24 = vpop.f32.mrb[8].mxu1 }
 0x1ba   : > { %v3081_v4 = vpop.f32.mrb[8].mxu0  ;;  %v1035_v9 = vpop.f32.mrb[9].mxu1 }
 0x1bb   : > { %v3459_v37 = vadd.f32 %v3081_v4, %v2857_v24  ;;  %v1812_v28 = vpop.f32.mrb[9].mxu0 }
 0x1bc   : > { %v3461_v40 = vadd.f32 %v1812_v28, %v1035_v9 }
 0x1bd   : > { %v2860_v32 = vpop.f32.mrb[10].mxu1 }
 0x1be   : > { %v3084_v36 = vpop.f32.mrb[10].mxu0  ;;  %v1045_v39 = vpop.f32.mrb[11].mxu1 }
 0x1bf   : > { %v3463_v42 = vadd.f32 %v3084_v36, %v2860_v32  ;;  %v1822_v43 = vpop.f32.mrb[11].mxu0 }
 0x1c0   : > { %v3465_v44 = vadd.f32 %v1822_v43, %v1045_v39 }
 0x1c1   : > { %v2863_v47 = vpop.f32.mrb[12].mxu1 }
 0x1c2   : > { %v3087_v50 = vpop.f32.mrb[12].mxu0  ;;  %v1055_v56 = vpop.f32.mrb[13].mxu1 }
 0x1c3   : > { %v3467_v60 = vadd.f32 %v3087_v50, %v2863_v47  ;;  %v1832_v0 = vpop.f32.mrb[13].mxu0 }
 0x1c4   : > { %v3469_v2 = vadd.f32 %v1832_v0, %v1055_v56 }
 0x1c5   : > { %v2866_v6 = vpop.f32.mrb[14].mxu1 }
 0x1c6   : > { %v3090_v8 = vpop.f32.mrb[14].mxu0  ;;  %v1065_v14 = vpop.f32.mrb[15].mxu1 }
 0x1c7   : > { %v4192_v16 = vadd.f32 %v3090_v8, %v2866_v6  ;;  %v1842_v17 = vpop.f32.mrb[15].mxu0 }
 0x1c8   : > { %v4194_v18 = vadd.f32 %v1842_v17, %v1065_v14 }
 0x1c9   : > { %v3137_v22 = vpop.f32.mrb[16].mxu1 }
 0x1ca   : > { %v3125_v23 = vpop.f32.mrb[0].mxu0  ;;  %v3460_v26 = vadd.f32 %v3459_v37, %v3137_v22  ;;  %v2006_v29 = vpop.f32.mrb[17].mxu1 }
 0x1cb   : > { %v3451_v31 = vadd.f32 %v3125_v23, %v2845_v62  ;;  %v1966_v48 = vpop.f32.mrb[1].mxu0  ;;  %v3462_v34 = vadd.f32 %v3461_v40, %v2006_v29 }
 0x1cc   : > { %v4202_v35 = vadd.f32 %v3460_v26, %v4199_v30  ;;  %v3452_v45 = vadd.f32 %v1966_v48, %v995_v1 }
 0x1cd   : > { %v2069_v49 = vadd.f32 %v3451_v31, %v4199_v30  ;;  %v4206_v51 = vadd.f32 %v3462_v34, %v4199_v30  ;;  %v3140_v53 = vpop.f32.mrb[18].mxu1 }
 0x1ce   : > { %2093 = vst [vmem:[%s3974_s30 + $0x48] sm:$0xff] %v4202_v35  ;;  %v2068_v57 = vadd.f32 %v3452_v45, %v4199_v30  ;;  %v3128_v59 = vpop.f32.mrb[2].mxu0  ;;  %v3464_v61 = vadd.f32 %v3463_v42, %v3140_v53  ;;  %v2016_v63 = vpop.f32.mrb[19].mxu1 }
 0x1cf   : > { %2085 = vst [vmem:[%s3974_s30 + $0x8] sm:$0xff] %v2069_v49  ;;  %v2123_v3 = vmul.f32 %v2069_v49, %v2069_v49  ;;  %2092 = vst [vmem:[%s3974_s30 + $0x40] sm:$0xff] %v4206_v51  ;;  %v3453_v5 = vadd.f32 %v3128_v59, %v2848_v46  ;;  %v1976_v7 = vpop.f32.mrb[3].mxu0  ;;  %v3466_v11 = vadd.f32 %v3465_v44, %v2016_v63 }
 0x1d0   : > { %2084 = vst [vmem:[%s3974_s30] sm:$0xff] %v2068_v57  ;;  %v2100_v13 = vadd.f32 %v2069_v49, %v2068_v57  ;;  %v2122_v12 = vmul.f32 %v2068_v57, %v2068_v57  ;;  %v4216_v20 = vadd.f32 %v3464_v61, %v4199_v30  ;;  %v3454_v19 = vadd.f32 %v1976_v7, %v1005_v54 }
 0x1d1   : > { %v2071_v25 = vadd.f32 %v3453_v5, %v4199_v30  ;;  %v4220_v21 = vadd.f32 %v3466_v11, %v4199_v30  ;;  %v3143_v33 = vpop.f32.mrb[20].mxu1 }
 0x1d2   : > { %v2138_v27 = vadd.f32 %v2123_v3, %v2122_v12  ;;  %2095 = vst [vmem:[%s3974_s30 + $0x58] sm:$0xff] %v4216_v20  ;;  %v2070_v38 = vadd.f32 %v3454_v19, %v4199_v30  ;;  %v3131_v52 = vpop.f32.mrb[4].mxu0  ;;  %v3468_v41 = vadd.f32 %v3467_v60, %v3143_v33  ;;  %v2026_v62 = vpop.f32.mrb[21].mxu1 }
 0x1d3   : > { %2087 = vst [vmem:[%s3974_s30 + $0x18] sm:$0xff] %v2071_v25  ;;  %2094 = vst [vmem:[%s3974_s30 + $0x50] sm:$0xff] %v4220_v21  ;;  %v3455_v1 = vadd.f32 %v3131_v52, %v4184_v10  ;;  %v1986_v46 = vpop.f32.mrb[5].mxu0  ;;  %v3470_v54 = vadd.f32 %v3469_v2, %v2026_v62  ;;  %v2125_v32 = vmul.f32 %v2071_v25, %v2071_v25 }
 0x1d4   : > { %2086 = vst [vmem:[%s3974_s30 + $0x10] sm:$0xff] %v2070_v38  ;;  %v2101_v24 = vadd.f32 %v2100_v13, %v2070_v38  ;;  %v2124_v4 = vmul.f32 %v2070_v38, %v2070_v38  ;;  %v4231_v9 = vadd.f32 %v3468_v41, %v4199_v30  ;;  %v3456_v37 = vadd.f32 %v1986_v46, %v4186_v55 }
 0x1d5   : > { %v2073_v28 = vadd.f32 %v3455_v1, %v4199_v30  ;;  %v4236_v40 = vadd.f32 %v3470_v54, %v4199_v30  ;;  %v3146_v10 = vpop.f32.mrb[22].mxu1 }
 0x1d6   : > { %v2139_v36 = vadd.f32 %v2138_v27, %v2124_v4  ;;  %2097 = vst [vmem:[%s3974_s30 + $0x68] sm:$0xff] %v4231_v9  ;;  %v2072_v39 = vadd.f32 %v3456_v37, %v4199_v30  ;;  %v2102_v42 = vadd.f32 %v2101_v24, %v2071_v25  ;;  %v3134_v43 = vpop.f32.mrb[6].mxu0  ;;  %v2036_v44 = vpop.f32.mrb[23].mxu1  ;;  %v3472_v47 = vadd.f32 %v4192_v16, %v3146_v10 }
 0x1d7   : > { %2089 = vst [vmem:[%s3974_s30 + $0x28] sm:$0xff] %v2073_v28  ;;  %2096 = vst [vmem:[%s3974_s30 + $0x60] sm:$0xff] %v4236_v40  ;;  %v3457_v55 = vadd.f32 %v3134_v43, %v4188_v15  ;;  %v1996_v50 = vpop.f32.mrb[7].mxu0  ;;  %v3474_v15 = vadd.f32 %v4194_v18, %v2036_v44  ;;  %v2127_v14 = vmul.f32 %v2073_v28, %v2073_v28 }
 0x1d8   : > { %2088 = vst [vmem:[%s3974_s30 + $0x20] sm:$0xff] %v2072_v39  ;;  %v2103_v56 = vadd.f32 %v2102_v42, %v2072_v39  ;;  %v2126_v60 = vmul.f32 %v2072_v39, %v2072_v39  ;;  %v2140_v0 = vadd.f32 %v2139_v36, %v2125_v32  ;;  %v3458_v2 = vadd.f32 %v1996_v50, %v4190_v58 }
 0x1d9   : > { %v2075_v6 = vadd.f32 %v3457_v55, %v4199_v30  ;;  %v4252_v8 = vadd.f32 %v3472_v47, %v4199_v30  ;;  %v2082_v58 = vadd.f32 %v3474_v15, %v4199_v30 }
 0x1da   : > { %v2141_v16 = vadd.f32 %v2140_v0, %v2126_v60  ;;  %v2074_v17 = vadd.f32 %v3458_v2, %v4199_v30  ;;  %v2104_v22 = vadd.f32 %v2103_v56, %v2073_v28 }
 0x1db   : > { %2091 = vst [vmem:[%s3974_s30 + $0x38] sm:$0xff] %v2075_v6  ;;  %2099 = vst [vmem:[%s3974_s30 + $0x78] sm:$0xff] %v4252_v8  ;;  %v2129_v29 = vmul.f32 %v2075_v6, %v2075_v6 }
 0x1dc   : > { %2090 = vst [vmem:[%s3974_s30 + $0x30] sm:$0xff] %v2074_v17  ;;  %v2105_v18 = vadd.f32 %v2104_v22, %v2074_v17  ;;  %v2128_v23 = vmul.f32 %v2074_v17, %v2074_v17  ;;  %v2142_v26 = vadd.f32 %v2141_v16, %v2127_v14  ;;  %2098 = vst [vmem:[%s3974_s30 + $0x70] sm:$0xff] %v2082_v58 }
 0x1de   : > { %v2106_v31 = vadd.f32 %v2105_v18, %v2075_v6  ;;  %v2143_v48 = vadd.f32 %v2142_v26, %v2128_v23 }
 0x1df   : > { %3695 = shalt.err (!%p3692_p5)
}
 0x1e0   : > { %s3696_s29 = scalar_lea.hbm %s4259_s5, 2048  ;;  %s3700_s14 = scalar_lea.hbm %s4372_s3, 4096 }
 0x1e1   : > { %p3697_p6 = scmp.ne.s32.totalorder %s4259_s5, %s3696_s29  ;;  %p3701_p12 = scmp.lt.u32.totalorder %s4259_s5, %s4372_s3 }
 0x1e2   : > { %p3702_p0 = scmp.lt.u32.totalorder %s3700_s14, %s3696_s29  ;;  %p3704_p4 = scmp.lt.u32.totalorder %s3696_s29, %s4259_s5 }
 0x1e3   : > { %p3698_p7 = pnand %p3697_p6, %p4385_p8 }
 0x1e4   : > { %p3703_p2 = por %p3702_p0, %p3701_p12 }
 0x1e5   : > { %p3699_p9 = pneg %p3698_p7 }
 0x1e6   : > { %p3705_p10 = por %p3704_p4, %p3703_p2 }
 0x1e8   : > { %p3706_p11 = pnand %p3705_p10, %p3699_p9 }
 0x1ea   : > { %3709 = shalt.err (!%p3706_p11)
}
 0x1eb   : > { %s3804_s26 = smov 128   ;;  %s3805_s9 = smov 8   ;;  %v2130_v30 = vmul.f32 %v4206_v51, %v4206_v51  ;;  %v2107_v34 = vadd.f32 %v2106_v31, %v4206_v51  ;;  %v2144_v45 = vadd.f32 %v2143_v48, %v2129_v29  ;;  %v2131_v49 = vmul.f32 %v4202_v35, %v4202_v35 }
 0x1ec   : > { %3583 = dma.vmem_to_hbm [thread:$0]  (%p4385_p8), %s4261_s22, 2048, %s4259_s5, %s2161_s7, %s3804_s26, %s3804_s26, %s3805_s9   ;;  %v2132_v59 = vmul.f32 %v4220_v21, %v4220_v21  ;;  %v2133_v3 = vmul.f32 %v4216_v20, %v4216_v20  ;;  %v2134_v51 = vmul.f32 %v4236_v40, %v4236_v40 }
 0x1ed   : > { %v2108_v53 = vadd.f32 %v2107_v34, %v4202_v35  ;;  %v2145_v57 = vadd.f32 %v2144_v45, %v2130_v30  ;;  %v2135_v35 = vmul.f32 %v4231_v9, %v4231_v9  ;;  %s2350_s22 = sshll.u32 %s3790_s18, 5  ;;  %s2198_s5 = sshll.u32 %s3978_s12, 4  ;;  %s4322_s5 = int_to_ptr.vmem [resolvable:$true] %s2198_s5 }
 0x1ee   : > { %s4320_s11 = scalar_lea.hbm %s4373_s4, %s2350_s22  ;;  %s2166_s6 = scalar_lea.sflag [#allocation9], %s3926_s8 }
 0x1ef   : > { %v2146_v61 = vadd.f32 %v2145_v57, %v2131_v49  ;;  %v2109_v63 = vadd.f32 %v2108_v53, %v4220_v21  ;;  %v2136_v21 = vmul.f32 %v2082_v58, %v2082_v58  ;;  %s3710_s29 = scalar_lea.vmem %s4322_s5, 32  ;;  %s3806_s18 = smov [#allocation8]  }
 0x1f0   : > { %p3711_p13 = scmp.ne.s32.totalorder %s4322_s5, %s3710_s29  ;;  %s3714_s30 = sshll.u32 %s3806_s18, 4  ;;  %s3715_s30 = int_to_ptr.vmem [resolvable:$false] %s3714_s30 }
 0x1f1   : > { %v2110_v5 = vadd.f32 %v2109_v63, %v4216_v20  ;;  %v2147_v7 = vadd.f32 %v2146_v61, %v2132_v59  ;;  %v2137_v20 = vmul.f32 %v4252_v8, %v4252_v8  ;;  %s3716_s13 = scalar_lea.vmem %s3715_s30, 64  ;;  %p3717_p5 = scmp.lt.s32.totalorder %s4322_s5, %s3715_s30 }
 0x1f2   : > { %p3712_p1 = pnand %p3711_p13, %p4385_p8  ;;  %p3718_p6 = scmp.lt.s32.totalorder %s3716_s13, %s3710_s29 }
 0x1f3   : > { %v2111_v11 = vadd.f32 %v2110_v5, %v4236_v40  ;;  %v2148_v13 = vadd.f32 %v2147_v7, %v2133_v3 }
 0x1f4   : > { %p3713_p3 = pneg %p3712_p1  ;;  %p3719_p7 = por %p3718_p6, %p3717_p5 }
 0x1f5   : > { %v2112_v12 = vadd.f32 %v2111_v11, %v4231_v9  ;;  %v2149_v19 = vadd.f32 %v2148_v13, %v2134_v51 }
 0x1f6   : > { %p3720_p9 = pnand %p3719_p7, %p3713_p3 }
 0x1f7   : > { %v2113_v25 = vadd.f32 %v2112_v12, %v2082_v58  ;;  %v2150_v33 = vadd.f32 %v2149_v19, %v2135_v35 }
 0x1f9   : > { %v2114_v27 = vadd.f32 %v2113_v25, %v4252_v8  ;;  %v2151_v38 = vadd.f32 %v2150_v33, %v2136_v21 }
 0x1fb   : > { %v2115_v52 = vrot.slane %v2114_v27, 4  ;;  %v2152_v41 = vadd.f32 %v2151_v38, %v2137_v20 }
 0x1fd   : > { %v2116_v62 = vadd.f32 %v2115_v52, %v2114_v27  ;;  %v2153_v1 = vrot.slane %v2152_v41, 4 }
 0x1ff   : > { %v2117_v46 = vrot.slane %v2116_v62, 2  ;;  %v2154_v54 = vadd.f32 %v2153_v1, %v2152_v41 }
 0x201   : > { %v2118_v24 = vadd.f32 %v2117_v46, %v2116_v62  ;;  %v2155_v4 = vrot.slane %v2154_v54, 2 }
 0x203   : > { %v2119_v9 = vrot.slane %v2118_v24, 1  ;;  %v2156_v37 = vadd.f32 %v2155_v4, %v2154_v54 }
 0x205   : > { %v2120_v28 = vadd.f32 %v2119_v9, %v2118_v24  ;;  %v2157_v40 = vrot.slane %v2156_v37, 1 }
 0x207   : > { %2121 = vst [vmem:[%s3978_s12] sm:$0x1] %v2120_v28  ;;  %v2158_v10 = vadd.f32 %v2157_v40, %v2156_v37 }
 0x209   : > { %2159 = vst [vmem:[%s3978_s12 + $0x1] sm:$0x1] %v2158_v10 }
 0x20a   : > { %3723 = shalt.err (!%p3720_p9)
}
 0x20b   : > { %s3724_s8 = scalar_lea.hbm %s4320_s11, 32  ;;  %s3728_s21 = scalar_lea.hbm %s4373_s4, 64 }
 0x20c   : > { %p3725_p12 = scmp.ne.s32.totalorder %s4320_s11, %s3724_s8  ;;  %p3729_p4 = scmp.lt.u32.totalorder %s4320_s11, %s4373_s4 }
 0x20d   : > { %p3730_p10 = scmp.lt.u32.totalorder %s3728_s21, %s3724_s8  ;;  %p3732_p13 = scmp.lt.u32.totalorder %s3724_s8, %s4320_s11 }
 0x20e   : > { %p3726_p0 = pnand %p3725_p12, %p4385_p8 }
 0x20f   : > { %p3731_p11 = por %p3730_p10, %p3729_p4 }
 0x210   : > { %p3727_p2 = pneg %p3726_p0 }
 0x211   : > { %p3733_p1 = por %p3732_p13, %p3731_p11 }
 0x213   : > { %p3734_p3 = pnand %p3733_p1, %p3727_p2 }
 0x215   : > { %3737 = shalt.err (!%p3734_p3)
}
 0x216   : > { %3584 = dma.vmem_to_hbm [thread:$0]  (%p4385_p8), %s4322_s5, 32, %s4320_s11, %s2166_s6  }
 0x217 PF: > { %p3600_p5 = scmp.ge.s32.totalorder %s3798_s20, 2  ;;  %s2210_s9 = sand.u32 1, %s3778_s15  }
 0x218   : > { %p4386_p6 = scmp.ne.s32.totalorder %s4379_s27, 0  ;;  %s2211_s22 = scalar_lea.sflag [#allocation6], %s2210_s9 }
 0x21a   : > { %p3592_p7 = pnand %p3600_p5, %p4386_p6 }
 0x21c   : > { %3769 = dma.done.wait (!%p3592_p7), %s2211_s22, 2048  }
 0x21d   : > { %3771 = vsyncadd (!%p3592_p7), %s2211_s22, 4294965248  ;;  %s2220_s7 = scalar_lea.sflag [#allocation9], %s2210_s9 }
 0x21e   : > { %3773 = dma.done.wait (!%p3592_p7), %s2220_s7, 32  }
 0x21f   : > { %3775 = vsyncadd (!%p3592_p7), %s2220_s7, 4294967264  ;;  %s22_s20 = sadd.s32 1, %s3798_s20   ;;  %s4387_s15 = smov %s3782_s16 }
 0x220   : > { %p19_p9 = scmp.ge.s32.totalorder %s22_s20, 4   ;;  %s4388_s16 = smov %s3786_s17 }
 0x221   : > { %s4389_s17 = smov %s3885_s28  ;;  %s4390_s18 = smov %s3794_s19 }
 0x222   : > { %s4391_s19 = smov %s4393_s23  ;;  %21 = sbr.rel (!%p19_p9) target bundleno = 7 (0x7), region = 144 }
 0x229   :  { %2225 = vsyncpa [#allocation5], 1 }
 0x22a   :  { %2227 = vsyncpa [#allocation5 + $0x1], 1 }
 0x22b   :  { %2228 = vsyncpa [#allocation6], 1 }
 0x22c   :  { %2230 = vsyncpa [#allocation6 + $0x1], 1 }
 0x22d   :  { %2231 = vsyncpa [#allocation9], 1 }
 0x22e   :  { %2233 = vsyncpa [#allocation9 + $0x1], 1 }
 0x22f   :  { %2234 = vsyncmov [#allocation3] }
 0x232   :  { %s2235_s25 = vpop.sfrf %2234 }
 0x233   :  { %p2353_p8 = scmp.ne.s32.totalorder %s2235_s25, 0 }
 0x235   :  { %2239 = shalt.err (%p2353_p8)  }

</bundles_post_ra>
